<compile_context>
chip_gen: v6e
topology: v6e:2x2x1
jax: 0.10.0
libtpu: 0.0.40
codegen_flags: <defaults>
</compile_context>

<pallas_src>
import jax
import jax.numpy as jnp
from jax.experimental import pallas as pl
from jax.experimental.pallas import tpu as pltpu

LANE = 128  # TPU vreg lane width


def _round_up(v, m):
    return -(-v // m) * m


def bottleneck_kernel(x_ref, w1_ref, s1_ref, b1_ref,
                      w2_ref, s2_ref, b2_ref,
                      w3_ref, s3_ref, b3_ref,
                      out_ref, pad_ref, col_ref):
    # Block shapes: x_ref/out_ref (1, H, W, Cp); pad_ref (H+2, W+2, Cwp) f32;
    # col_ref (H*W, 9*Cwp) bf16.
    H, W, Cp = x_ref.shape[1], x_ref.shape[2], x_ref.shape[3]
    Cw = w1_ref.shape[1]
    HW = H * W

    # ---- conv1 (1x1) + bn1 + relu  (bf16 MXU inputs, f32 accumulate) ----------
    x_bf = x_ref[...].reshape(HW, Cp).astype(jnp.bfloat16)
    o1 = jnp.dot(x_bf, w1_ref[...], preferred_element_type=jnp.float32)
    o1 = jnp.maximum(o1 * s1_ref[...] + b1_ref[...], 0.0)

    # ---- conv2 (3x3, stride 1, pad 1) + bn2 + relu ----------------------------
    # Zero only the 1-element halo border; the interior is fully overwritten
    # every step.  (Scratch persists across grid iterations and each TensorCore
    # owns its own scratch under "parallel" semantics, so this runs per step.)
    zrow = jnp.zeros((1, W + 2, Cw), jnp.float32)
    zcol = jnp.zeros((H, 1, Cw), jnp.float32)
    pad_ref[0:1, :, :] = zrow
    pad_ref[H + 1:H + 2, :, :] = zrow
    pad_ref[1:H + 1, 0:1, :] = zcol
    pad_ref[1:H + 1, W + 1:W + 2, :] = zcol
    pad_ref[1:H + 1, 1:W + 1, :] = o1.reshape(H, W, Cw)

    # One-time im2col build (lane-aligned 128-wide column stores; the bf16 cast
    # is fused into each store), then a single big MXU matmul with K = 9*Cw
    # instead of 9 half-utilised K=Cw matmuls.
    for k in range(9):
        ky, kx = k // 3, k % 3
        patch = pad_ref[ky:ky + H, kx:kx + W, :].reshape(HW, Cw)
        col_ref[:, k * Cw:(k + 1) * Cw] = patch.astype(jnp.bfloat16)
    o2 = jnp.dot(col_ref[...], w2_ref[...], preferred_element_type=jnp.float32)
    o2 = jnp.maximum(o2 * s2_ref[...] + b2_ref[...], 0.0)

    # ---- conv3 (1x1) + bn3 -----------------------------------------------------
    o3 = jnp.dot(o2.astype(jnp.bfloat16), w3_ref[...],
                 preferred_element_type=jnp.float32)
    o3 = o3 * s3_ref[...] + b3_ref[...]

    # ---- residual add + relu (re-read identity here; keep math in f32) --------
    identity = x_ref[...].reshape(HW, Cp)
    out = jnp.maximum(o3 + identity, 0.0)
    out_ref[...] = out.reshape(1, H, W, Cp).astype(out_ref.dtype)


def bottleneck_forward_nhwc(x_nhwc, kp):
    """x_nhwc: (N, H, W, Cin) f32, NHWC end-to-end path. Returns (N, H, W, Cout)."""
    N, H, W, cin = x_nhwc.shape
    cp, cwp, cout = kp["cp"], kp["cwp"], kp["cout"]

    x = x_nhwc
    if cp != cin:  # pad channels to a lane multiple (no-op at real ResNet widths)
        x = jnp.pad(x, ((0, 0), (0, 0), (0, 0), (0, cp - cin)))

    # Advisory cost model for XLA's scheduler around the custom call.
    flops = 2 * N * H * W * (cp * cwp + 9 * cwp * cwp + cwp * cp)
    bytes_accessed = (
        2 * N * H * W * cp * 4                       # x in + out (f32)
        + (cp * cwp + 9 * cwp * cwp + cwp * cp) * 2  # bf16 weights
        + (4 * cwp + 2 * cp) * 4                     # folded BN scale/shift
    )
    cost = pl.CostEstimate(flops=flops, transcendentals=0,
                           bytes_accessed=bytes_accessed)

    vmem = pl.BlockSpec(memory_space=pltpu.MemorySpace.VMEM)  # whole-array resident
    grid_spec = pltpu.PrefetchScalarGridSpec(
        num_scalar_prefetch=0,
        grid=(N,),
        in_specs=[pl.BlockSpec((1, H, W, cp), lambda n: (n, 0, 0, 0))] + [vmem] * 9,
        out_specs=pl.BlockSpec((1, H, W, cp), lambda n: (n, 0, 0, 0)),
        scratch_shapes=[
            pltpu.VMEM((H + 2, W + 2, cwp), jnp.float32),    # zero-halo conv2 input
            pltpu.VMEM((H * W, 9 * cwp), jnp.bfloat16),      # im2col patches
        ],
    )
    out_p = pl.pallas_call(
        bottleneck_kernel,
        out_shape=jax.ShapeDtypeStruct((N, H, W, cp), jnp.float32),
        grid_spec=grid_spec,
        compiler_params=pltpu.CompilerParams(
            dimension_semantics=("parallel",),        # shard batch across TCs (v7x)
            vmem_limit_bytes=32 * 1024 * 1024,        # explicit, safe on v5e/v6e/v7x
        ),
        cost_estimate=cost,
    )(x, kp["w1"], kp["s1"], kp["b1"],
      kp["w2"], kp["s2"], kp["b2"],
      kp["w3"], kp["s3"], kp["b3"])

    return out_p[..., :cout] if cp != cout else out_p


def bottleneck_forward(x_nchw, kp):
    """PyTorch-layout wrapper: (N, Cin, H, W) -> (N, Cout, H, W)."""
    # TODO(synk): keep the surrounding model NHWC end-to-end; these transposes
    # exist only for NCHW (PyTorch) parity at the boundary.
    x = jnp.transpose(x_nchw, (0, 2, 3, 1))
    out = bottleneck_forward_nhwc(x, kp)
    return jnp.transpose(out, (0, 3, 1, 2))


def make_params(key, inplanes, planes, base_width=64, groups=1):
    """Deterministic synthetic parameters; BN folded to scale/shift (eval mode)."""
    expansion = 4
    width = int(planes * (base_width / 64.0)) * groups
    cout = planes * expansion
    ks = jax.random.split(key, 15)

    def bn_fold(kg, kb, km, kv, c, eps=1e-5):
        gamma = 1.0 + 0.1 * jax.random.normal(kg, (c,), jnp.float32)
        beta = 0.1 * jax.random.normal(kb, (c,), jnp.float32)
        mean = 0.1 * jax.random.normal(km, (c,), jnp.float32)
        var = jnp.abs(jax.random.normal(kv, (c,), jnp.float32)) + 0.5
        s = gamma / jnp.sqrt(var + eps)
        b = beta - mean * s
        return s, b

    s1, b1 = bn_fold(ks[3], ks[4], ks[5], ks[6], width)
    s2, b2 = bn_fold(ks[7], ks[8], ks[9], ks[10], width)
    s3, b3 = bn_fold(ks[11], ks[12], ks[13], ks[14], cout)
    return {
        # conv1x1: (Cin, Cw) so y = x @ w ; conv3x3: HWIO (3, 3, Cw, Cw)
        "w1": 0.1 * jax.random.normal(ks[0], (inplanes, width), jnp.float32),
        "w2": 0.1 * jax.random.normal(ks[1], (3, 3, width, width), jnp.float32),
        "w3": 0.1 * jax.random.normal(ks[2], (width, cout), jnp.float32),
        "s1": s1, "b1": b1, "s2": s2, "b2": b2, "s3": s3, "b3": b3,
        "inplanes": inplanes, "width": width, "cout": cout,
    }


def prepare_kernel_params(p):
    """Pad channels to lane multiples, cast weights to bf16, build im2col weight."""
    cin, cw, cout = p["inplanes"], p["width"], p["cout"]
    assert cin == cout, "identity residual requires inplanes == planes * expansion"
    cp = _round_up(cin, LANE)
    cwp = _round_up(cw, LANE)

    w1 = jnp.pad(p["w1"], ((0, cp - cin), (0, cwp - cw))).astype(jnp.bfloat16)
    w2 = jnp.pad(p["w2"], ((0, 0), (0, 0), (0, cwp - cw), (0, cwp - cw)))
    w2 = w2.reshape(9 * cwp, cwp).astype(jnp.bfloat16)       # im2col weight layout
    w3 = jnp.pad(p["w3"], ((0, cwp - cw), (0, cp - cout))).astype(jnp.bfloat16)

    def pad_vec(v, c):
        return jnp.pad(v, (0, c - v.shape[0])).reshape(1, c).astype(jnp.float32)

    return {
        "w1": w1, "w2": w2, "w3": w3,
        "s1": pad_vec(p["s1"], cwp), "b1": pad_vec(p["b1"], cwp),
        "s2": pad_vec(p["s2"], cwp), "b2": pad_vec(p["b2"], cwp),
        "s3": pad_vec(p["s3"], cp), "b3": pad_vec(p["b3"], cp),
        "cin": cin, "cout": cout, "cp": cp, "cwp": cwp,
    }


def bottleneck_reference(x_nchw, p):
    """Pure-JAX reference (lax conv). It mirrors the kernel's MXU precision
    (bf16 conv inputs, f32 accumulation, f32 BN/ReLU/residual) so the comparison
    isolates structural correctness."""
    x = jnp.transpose(x_nchw, (0, 2, 3, 1))
    dn = ("NHWC", "HWIO", "NHWC")
    bf = jnp.bfloat16

    def conv(a, w_hwio):
        pad = ((0, 0), (0, 0)) if w_hwio.shape[0] == 1 else ((1, 1), (1, 1))
        return jax.lax.conv_general_dilated(
            a.astype(bf), w_hwio.astype(bf), (1, 1), pad,
            dimension_numbers=dn, preferred_element_type=jnp.float32)

    o1 = conv(x, p["w1"][None, None])
    o1 = jnp.maximum(o1 * p["s1"] + p["b1"], 0.0)
    o2 = conv(o1, p["w2"])
    o2 = jnp.maximum(o2 * p["s2"] + p["b2"], 0.0)
    o3 = conv(o2, p["w3"][None, None])
    o3 = o3 * p["s3"] + p["b3"]
    out = jnp.maximum(o3 + x, 0.0)
    return jnp.transpose(out, (0, 3, 1, 2))


if __name__ == "__main__":
    # Bottleneck(inplanes=32, planes=8): width=8, output channels=32 (== inplanes,
    # so the identity residual is valid with stride=1 and no downsample).
    N, inplanes, planes, H, W = 2, 32, 8, 8, 8

    key = jax.random.PRNGKey(0)
    kx, kparam = jax.random.split(key)
    x = jax.random.normal(kx, (N, inplanes, H, W), jnp.float32)  # NCHW like PyTorch
    params = make_params(kparam, inplanes, planes)
    kparams = prepare_kernel_params(params)

    out = bottleneck_forward(x, kparams)
    out = jax.block_until_ready(out)

    ref = bottleneck_reference(x, params)
    assert out.shape == (N, planes * 4, H, W)
    max_err = jnp.max(jnp.abs(out - ref))
    assert jnp.allclose(out, ref, atol=2e-2, rtol=2e-2), f"max abs err {max_err}"

    print("KERNEL_OK")
</pallas_src>

<mosaic_0001>
module attributes {stable_mosaic.version = 11 : i64} {
  func.func @bottleneck_kernel(%arg0: i32, %arg1: memref<1x8x8x128xf32, #tpu.memory_space<vmem>>, %arg2: memref<128x128xbf16, #tpu.memory_space<vmem>>, %arg3: memref<1x128xf32, #tpu.memory_space<vmem>>, %arg4: memref<1x128xf32, #tpu.memory_space<vmem>>, %arg5: memref<1152x128xbf16, #tpu.memory_space<vmem>>, %arg6: memref<1x128xf32, #tpu.memory_space<vmem>>, %arg7: memref<1x128xf32, #tpu.memory_space<vmem>>, %arg8: memref<128x128xbf16, #tpu.memory_space<vmem>>, %arg9: memref<1x128xf32, #tpu.memory_space<vmem>>, %arg10: memref<1x128xf32, #tpu.memory_space<vmem>>, %arg11: memref<1x8x8x128xf32, #tpu.memory_space<vmem>>, %arg12: memref<10x10x128xf32, #tpu.memory_space<vmem>>, %arg13: memref<64x1152xbf16, #tpu.memory_space<vmem>>) attributes {dimension_semantics = [#tpu.dimension_semantics<parallel>], iteration_bounds = array<i64: 2>, scalar_prefetch = 0 : i64, scratch_operands = 2 : i64, tpu.core_type = #tpu.core_type<tc>, window_params = [{transform_indices = @transform_0, window_bounds = array<i64: 1, 8, 8, 128>}, {pipeline_mode = #tpu.pipeline_mode<synchronous>, transform_indices = @transform_1, window_bounds = array<i64: 128, 128>}, {pipeline_mode = #tpu.pipeline_mode<synchronous>, transform_indices = @transform_2, window_bounds = array<i64: 1, 128>}, {pipeline_mode = #tpu.pipeline_mode<synchronous>, transform_indices = @transform_3, window_bounds = array<i64: 1, 128>}, {pipeline_mode = #tpu.pipeline_mode<synchronous>, transform_indices = @transform_4, window_bounds = array<i64: 1152, 128>}, {pipeline_mode = #tpu.pipeline_mode<synchronous>, transform_indices = @transform_5, window_bounds = array<i64: 1, 128>}, {pipeline_mode = #tpu.pipeline_mode<synchronous>, transform_indices = @transform_6, window_bounds = array<i64: 1, 128>}, {pipeline_mode = #tpu.pipeline_mode<synchronous>, transform_indices = @transform_7, window_bounds = array<i64: 128, 128>}, {pipeline_mode = #tpu.pipeline_mode<synchronous>, transform_indices = @transform_8, window_bounds = array<i64: 1, 128>}, {pipeline_mode = #tpu.pipeline_mode<synchronous>, transform_indices = @transform_9, window_bounds = array<i64: 1, 128>}, {transform_indices = @transform_10, window_bounds = array<i64: 1, 8, 8, 128>}]} {
    %c0 = arith.constant 0 : index
    %c0_0 = arith.constant 0 : index
    %c0_1 = arith.constant 0 : index
    %c0_2 = arith.constant 0 : index
    %0 = vector.load %arg1[%c0, %c0_0, %c0_1, %c0_2] : memref<1x8x8x128xf32, #tpu.memory_space<vmem>>, vector<1x8x8x128xf32>
    %1 = vector.shape_cast %0 : vector<1x8x8x128xf32> to vector<64x128xf32>
    %2 = arith.truncf %1 : vector<64x128xf32> to vector<64x128xbf16>
    %c0_3 = arith.constant 0 : index
    %c0_4 = arith.constant 0 : index
    %3 = vector.load %arg2[%c0_3, %c0_4] : memref<128x128xbf16, #tpu.memory_space<vmem>>, vector<128x128xbf16>
    %cst = arith.constant dense<0.000000e+00> : vector<64x128xf32>
    %4 = tpu.matmul %2, %3, %cst {dimension_numbers = #tpu.dot_dimension_numbers<[1], [0], [0], [1], [0, 0, 1, 1], [], []>} : vector<64x128xbf16>, vector<128x128xbf16>, vector<64x128xf32> -> vector<64x128xf32>
    %c0_5 = arith.constant 0 : index
    %c0_6 = arith.constant 0 : index
    %5 = vector.load %arg3[%c0_5, %c0_6] : memref<1x128xf32, #tpu.memory_space<vmem>>, vector<1x128xf32>
    %6 = vector.broadcast %5 : vector<1x128xf32> to vector<64x128xf32>
    %7 = arith.mulf %4, %6 : vector<64x128xf32>
    %c0_7 = arith.constant 0 : index
    %c0_8 = arith.constant 0 : index
    %8 = vector.load %arg4[%c0_7, %c0_8] : memref<1x128xf32, #tpu.memory_space<vmem>>, vector<1x128xf32>
    %9 = vector.broadcast %8 : vector<1x128xf32> to vector<64x128xf32>
    %10 = arith.addf %7, %9 : vector<64x128xf32>
    %cst_9 = arith.constant 0.000000e+00 : f32
    %11 = vector.broadcast %cst_9 : f32 to vector<64x128xf32>
    %12 = arith.maximumf %10, %11 : vector<64x128xf32>
    %cst_10 = arith.constant 0.000000e+00 : f32
    %13 = vector.broadcast %cst_10 : f32 to vector<1x10x128xf32>
    %cst_11 = arith.constant 0.000000e+00 : f32
    %14 = vector.broadcast %cst_11 : f32 to vector<8x1x128xf32>
    %c0_12 = arith.constant 0 : index
    %c0_13 = arith.constant 0 : index
    %c0_14 = arith.constant 0 : index
    %15 = vector.load %arg12[%c0_12, %c0_13, %c0_14] : memref<10x10x128xf32, #tpu.memory_space<vmem>>, vector<1x10x128xf32>
    tpu.vector_store %arg12[%c0_12, %c0_13, %c0_14], %13 {strides = array<i32>} : memref<10x10x128xf32, #tpu.memory_space<vmem>>, vector<1x10x128xf32>,
    %c9 = arith.constant 9 : index
    %c0_15 = arith.constant 0 : index
    %c0_16 = arith.constant 0 : index
    %16 = vector.load %arg12[%c9, %c0_15, %c0_16] : memref<10x10x128xf32, #tpu.memory_space<vmem>>, vector<1x10x128xf32>
    tpu.vector_store %arg12[%c9, %c0_15, %c0_16], %13 {strides = array<i32>} : memref<10x10x128xf32, #tpu.memory_space<vmem>>, vector<1x10x128xf32>,
    %c1 = arith.constant 1 : index
    %c0_17 = arith.constant 0 : index
    %c0_18 = arith.constant 0 : index
    %17 = vector.load %arg12[%c1, %c0_17, %c0_18] : memref<10x10x128xf32, #tpu.memory_space<vmem>>, vector<8x1x128xf32>
    tpu.vector_store %arg12[%c1, %c0_17, %c0_18], %14 {strides = array<i32>} : memref<10x10x128xf32, #tpu.memory_space<vmem>>, vector<8x1x128xf32>,
    %c1_19 = arith.constant 1 : index
    %c9_20 = arith.constant 9 : index
    %c0_21 = arith.constant 0 : index
    %18 = vector.load %arg12[%c1_19, %c9_20, %c0_21] : memref<10x10x128xf32, #tpu.memory_space<vmem>>, vector<8x1x128xf32>
    tpu.vector_store %arg12[%c1_19, %c9_20, %c0_21], %14 {strides = array<i32>} : memref<10x10x128xf32, #tpu.memory_space<vmem>>, vector<8x1x128xf32>,
    %19 = vector.shape_cast %12 : vector<64x128xf32> to vector<8x8x128xf32>
    %c1_22 = arith.constant 1 : index
    %c1_23 = arith.constant 1 : index
    %c0_24 = arith.constant 0 : index
    %20 = vector.load %arg12[%c1_22, %c1_23, %c0_24] : memref<10x10x128xf32, #tpu.memory_space<vmem>>, vector<8x8x128xf32>
    tpu.vector_store %arg12[%c1_22, %c1_23, %c0_24], %19 {strides = array<i32>} : memref<10x10x128xf32, #tpu.memory_space<vmem>>, vector<8x8x128xf32>,
    %c0_25 = arith.constant 0 : index
    %c0_26 = arith.constant 0 : index
    %c0_27 = arith.constant 0 : index
    %21 = vector.load %arg12[%c0_25, %c0_26, %c0_27] : memref<10x10x128xf32, #tpu.memory_space<vmem>>, vector<8x8x128xf32>
    %22 = vector.shape_cast %21 : vector<8x8x128xf32> to vector<64x128xf32>
    %23 = arith.truncf %22 : vector<64x128xf32> to vector<64x128xbf16>
    %c0_28 = arith.constant 0 : index
    %c0_29 = arith.constant 0 : index
    %24 = vector.load %arg13[%c0_28, %c0_29] : memref<64x1152xbf16, #tpu.memory_space<vmem>>, vector<64x128xbf16>
    tpu.vector_store %arg13[%c0_28, %c0_29], %23 {strides = array<i32>} : memref<64x1152xbf16, #tpu.memory_space<vmem>>, vector<64x128xbf16>,
    %c0_30 = arith.constant 0 : index
    %c1_31 = arith.constant 1 : index
    %c0_32 = arith.constant 0 : index
    %25 = vector.load %arg12[%c0_30, %c1_31, %c0_32] : memref<10x10x128xf32, #tpu.memory_space<vmem>>, vector<8x8x128xf32>
    %26 = vector.shape_cast %25 : vector<8x8x128xf32> to vector<64x128xf32>
    %27 = arith.truncf %26 : vector<64x128xf32> to vector<64x128xbf16>
    %c0_33 = arith.constant 0 : index
    %c128 = arith.constant 128 : index
    %28 = vector.load %arg13[%c0_33, %c128] : memref<64x1152xbf16, #tpu.memory_space<vmem>>, vector<64x128xbf16>
    tpu.vector_store %arg13[%c0_33, %c128], %27 {strides = array<i32>} : memref<64x1152xbf16, #tpu.memory_space<vmem>>, vector<64x128xbf16>,
    %c0_34 = arith.constant 0 : index
    %c2 = arith.constant 2 : index
    %c0_35 = arith.constant 0 : index
    %29 = vector.load %arg12[%c0_34, %c2, %c0_35] : memref<10x10x128xf32, #tpu.memory_space<vmem>>, vector<8x8x128xf32>
    %30 = vector.shape_cast %29 : vector<8x8x128xf32> to vector<64x128xf32>
    %31 = arith.truncf %30 : vector<64x128xf32> to vector<64x128xbf16>
    %c0_36 = arith.constant 0 : index
    %c256 = arith.constant 256 : index
    %32 = vector.load %arg13[%c0_36, %c256] : memref<64x1152xbf16, #tpu.memory_space<vmem>>, vector<64x128xbf16>
    tpu.vector_store %arg13[%c0_36, %c256], %31 {strides = array<i32>} : memref<64x1152xbf16, #tpu.memory_space<vmem>>, vector<64x128xbf16>,
    %c1_37 = arith.constant 1 : index
    %c0_38 = arith.constant 0 : index
    %c0_39 = arith.constant 0 : index
    %33 = vector.load %arg12[%c1_37, %c0_38, %c0_39] : memref<10x10x128xf32, #tpu.memory_space<vmem>>, vector<8x8x128xf32>
    %34 = vector.shape_cast %33 : vector<8x8x128xf32> to vector<64x128xf32>
    %35 = arith.truncf %34 : vector<64x128xf32> to vector<64x128xbf16>
    %c0_40 = arith.constant 0 : index
    %c384 = arith.constant 384 : index
    %36 = vector.load %arg13[%c0_40, %c384] : memref<64x1152xbf16, #tpu.memory_space<vmem>>, vector<64x128xbf16>
    tpu.vector_store %arg13[%c0_40, %c384], %35 {strides = array<i32>} : memref<64x1152xbf16, #tpu.memory_space<vmem>>, vector<64x128xbf16>,
    %c1_41 = arith.constant 1 : index
    %c1_42 = arith.constant 1 : index
    %c0_43 = arith.constant 0 : index
    %37 = vector.load %arg12[%c1_41, %c1_42, %c0_43] : memref<10x10x128xf32, #tpu.memory_space<vmem>>, vector<8x8x128xf32>
    %38 = vector.shape_cast %37 : vector<8x8x128xf32> to vector<64x128xf32>
    %39 = arith.truncf %38 : vector<64x128xf32> to vector<64x128xbf16>
    %c0_44 = arith.constant 0 : index
    %c512 = arith.constant 512 : index
    %40 = vector.load %arg13[%c0_44, %c512] : memref<64x1152xbf16, #tpu.memory_space<vmem>>, vector<64x128xbf16>
    tpu.vector_store %arg13[%c0_44, %c512], %39 {strides = array<i32>} : memref<64x1152xbf16, #tpu.memory_space<vmem>>, vector<64x128xbf16>,
    %c1_45 = arith.constant 1 : index
    %c2_46 = arith.constant 2 : index
    %c0_47 = arith.constant 0 : index
    %41 = vector.load %arg12[%c1_45, %c2_46, %c0_47] : memref<10x10x128xf32, #tpu.memory_space<vmem>>, vector<8x8x128xf32>
    %42 = vector.shape_cast %41 : vector<8x8x128xf32> to vector<64x128xf32>
    %43 = arith.truncf %42 : vector<64x128xf32> to vector<64x128xbf16>
    %c0_48 = arith.constant 0 : index
    %c640 = arith.constant 640 : index
    %44 = vector.load %arg13[%c0_48, %c640] : memref<64x1152xbf16, #tpu.memory_space<vmem>>, vector<64x128xbf16>
    tpu.vector_store %arg13[%c0_48, %c640], %43 {strides = array<i32>} : memref<64x1152xbf16, #tpu.memory_space<vmem>>, vector<64x128xbf16>,
    %c2_49 = arith.constant 2 : index
    %c0_50 = arith.constant 0 : index
    %c0_51 = arith.constant 0 : index
    %45 = vector.load %arg12[%c2_49, %c0_50, %c0_51] : memref<10x10x128xf32, #tpu.memory_space<vmem>>, vector<8x8x128xf32>
    %46 = vector.shape_cast %45 : vector<8x8x128xf32> to vector<64x128xf32>
    %47 = arith.truncf %46 : vector<64x128xf32> to vector<64x128xbf16>
    %c0_52 = arith.constant 0 : index
    %c768 = arith.constant 768 : index
    %48 = vector.load %arg13[%c0_52, %c768] : memref<64x1152xbf16, #tpu.memory_space<vmem>>, vector<64x128xbf16>
    tpu.vector_store %arg13[%c0_52, %c768], %47 {strides = array<i32>} : memref<64x1152xbf16, #tpu.memory_space<vmem>>, vector<64x128xbf16>,
    %c2_53 = arith.constant 2 : index
    %c1_54 = arith.constant 1 : index
    %c0_55 = arith.constant 0 : index
    %49 = vector.load %arg12[%c2_53, %c1_54, %c0_55] : memref<10x10x128xf32, #tpu.memory_space<vmem>>, vector<8x8x128xf32>
    %50 = vector.shape_cast %49 : vector<8x8x128xf32> to vector<64x128xf32>
    %51 = arith.truncf %50 : vector<64x128xf32> to vector<64x128xbf16>
    %c0_56 = arith.constant 0 : index
    %c896 = arith.constant 896 : index
    %52 = vector.load %arg13[%c0_56, %c896] : memref<64x1152xbf16, #tpu.memory_space<vmem>>, vector<64x128xbf16>
    tpu.vector_store %arg13[%c0_56, %c896], %51 {strides = array<i32>} : memref<64x1152xbf16, #tpu.memory_space<vmem>>, vector<64x128xbf16>,
    %c2_57 = arith.constant 2 : index
    %c2_58 = arith.constant 2 : index
    %c0_59 = arith.constant 0 : index
    %53 = vector.load %arg12[%c2_57, %c2_58, %c0_59] : memref<10x10x128xf32, #tpu.memory_space<vmem>>, vector<8x8x128xf32>
    %54 = vector.shape_cast %53 : vector<8x8x128xf32> to vector<64x128xf32>
    %55 = arith.truncf %54 : vector<64x128xf32> to vector<64x128xbf16>
    %c0_60 = arith.constant 0 : index
    %c1024 = arith.constant 1024 : index
    %56 = vector.load %arg13[%c0_60, %c1024] : memref<64x1152xbf16, #tpu.memory_space<vmem>>, vector<64x128xbf16>
    tpu.vector_store %arg13[%c0_60, %c1024], %55 {strides = array<i32>} : memref<64x1152xbf16, #tpu.memory_space<vmem>>, vector<64x128xbf16>,
    %c0_61 = arith.constant 0 : index
    %c0_62 = arith.constant 0 : index
    %57 = vector.load %arg13[%c0_61, %c0_62] : memref<64x1152xbf16, #tpu.memory_space<vmem>>, vector<64x1152xbf16>
    %c0_63 = arith.constant 0 : index
    %c0_64 = arith.constant 0 : index
    %58 = vector.load %arg5[%c0_63, %c0_64] : memref<1152x128xbf16, #tpu.memory_space<vmem>>, vector<1152x128xbf16>
    %cst_65 = arith.constant dense<0.000000e+00> : vector<64x128xf32>
    %59 = tpu.matmul %57, %58, %cst_65 {dimension_numbers = #tpu.dot_dimension_numbers<[1], [0], [0], [1], [0, 0, 1, 1], [], []>} : vector<64x1152xbf16>, vector<1152x128xbf16>, vector<64x128xf32> -> vector<64x128xf32>
    %c0_66 = arith.constant 0 : index
    %c0_67 = arith.constant 0 : index
    %60 = vector.load %arg6[%c0_66, %c0_67] : memref<1x128xf32, #tpu.memory_space<vmem>>, vector<1x128xf32>
    %61 = vector.broadcast %60 : vector<1x128xf32> to vector<64x128xf32>
    %62 = arith.mulf %59, %61 : vector<64x128xf32>
    %c0_68 = arith.constant 0 : index
    %c0_69 = arith.constant 0 : index
    %63 = vector.load %arg7[%c0_68, %c0_69] : memref<1x128xf32, #tpu.memory_space<vmem>>, vector<1x128xf32>
    %64 = vector.broadcast %63 : vector<1x128xf32> to vector<64x128xf32>
    %65 = arith.addf %62, %64 : vector<64x128xf32>
    %cst_70 = arith.constant 0.000000e+00 : f32
    %66 = vector.broadcast %cst_70 : f32 to vector<64x128xf32>
    %67 = arith.maximumf %65, %66 : vector<64x128xf32>
    %68 = arith.truncf %67 : vector<64x128xf32> to vector<64x128xbf16>
    %c0_71 = arith.constant 0 : index
    %c0_72 = arith.constant 0 : index
    %69 = vector.load %arg8[%c0_71, %c0_72] : memref<128x128xbf16, #tpu.memory_space<vmem>>, vector<128x128xbf16>
    %cst_73 = arith.constant dense<0.000000e+00> : vector<64x128xf32>
    %70 = tpu.matmul %68, %69, %cst_73 {dimension_numbers = #tpu.dot_dimension_numbers<[1], [0], [0], [1], [0, 0, 1, 1], [], []>} : vector<64x128xbf16>, vector<128x128xbf16>, vector<64x128xf32> -> vector<64x128xf32>
    %c0_74 = arith.constant 0 : index
    %c0_75 = arith.constant 0 : index
    %71 = vector.load %arg9[%c0_74, %c0_75] : memref<1x128xf32, #tpu.memory_space<vmem>>, vector<1x128xf32>
    %72 = vector.broadcast %71 : vector<1x128xf32> to vector<64x128xf32>
    %73 = arith.mulf %70, %72 : vector<64x128xf32>
    %c0_76 = arith.constant 0 : index
    %c0_77 = arith.constant 0 : index
    %74 = vector.load %arg10[%c0_76, %c0_77] : memref<1x128xf32, #tpu.memory_space<vmem>>, vector<1x128xf32>
    %75 = vector.broadcast %74 : vector<1x128xf32> to vector<64x128xf32>
    %76 = arith.addf %73, %75 : vector<64x128xf32>
    %c0_78 = arith.constant 0 : index
    %c0_79 = arith.constant 0 : index
    %c0_80 = arith.constant 0 : index
    %c0_81 = arith.constant 0 : index
    %77 = vector.load %arg1[%c0_78, %c0_79, %c0_80, %c0_81] : memref<1x8x8x128xf32, #tpu.memory_space<vmem>>, vector<1x8x8x128xf32>
    %78 = vector.shape_cast %77 : vector<1x8x8x128xf32> to vector<64x128xf32>
    %79 = arith.addf %76, %78 : vector<64x128xf32>
    %cst_82 = arith.constant 0.000000e+00 : f32
    %80 = vector.broadcast %cst_82 : f32 to vector<64x128xf32>
    %81 = arith.maximumf %79, %80 : vector<64x128xf32>
    %82 = vector.shape_cast %81 : vector<64x128xf32> to vector<1x8x8x128xf32>
    %c0_83 = arith.constant 0 : index
    %c0_84 = arith.constant 0 : index
    %c0_85 = arith.constant 0 : index
    %c0_86 = arith.constant 0 : index
    %83 = vector.load %arg11[%c0_83, %c0_84, %c0_85, %c0_86] : memref<1x8x8x128xf32, #tpu.memory_space<vmem>>, vector<1x8x8x128xf32>
    tpu.vector_store %arg11[%c0_83, %c0_84, %c0_85, %c0_86], %82 {strides = array<i32>} : memref<1x8x8x128xf32, #tpu.memory_space<vmem>>, vector<1x8x8x128xf32>,
    return
  }
  func.func @transform_0(%arg0: i32) -> (i32, i32, i32, i32) {
    %c0_i32 = arith.constant 0 : i32
    %c0_i32_0 = arith.constant 0 : i32
    %c0_i32_1 = arith.constant 0 : i32
    %c0_i32_2 = arith.constant 0 : i32
    return %arg0, %c0_i32, %c0_i32_0, %c0_i32_1 : i32, i32, i32, i32
  }
  func.func @transform_1(%arg0: i32) -> (i32, i32) {
    %c0_i32 = arith.constant 0 : i32
    %c0_i32_0 = arith.constant 0 : i32
    %c0_i32_1 = arith.constant 0 : i32
    return %c0_i32, %c0_i32_0 : i32, i32
  }
  func.func @transform_2(%arg0: i32) -> (i32, i32) {
    %c0_i32 = arith.constant 0 : i32
    %c0_i32_0 = arith.constant 0 : i32
    %c0_i32_1 = arith.constant 0 : i32
    return %c0_i32, %c0_i32_0 : i32, i32
  }
  func.func @transform_3(%arg0: i32) -> (i32, i32) {
    %c0_i32 = arith.constant 0 : i32
    %c0_i32_0 = arith.constant 0 : i32
    %c0_i32_1 = arith.constant 0 : i32
    return %c0_i32, %c0_i32_0 : i32, i32
  }
  func.func @transform_4(%arg0: i32) -> (i32, i32) {
    %c0_i32 = arith.constant 0 : i32
    %c0_i32_0 = arith.constant 0 : i32
    %c0_i32_1 = arith.constant 0 : i32
    return %c0_i32, %c0_i32_0 : i32, i32
  }
  func.func @transform_5(%arg0: i32) -> (i32, i32) {
    %c0_i32 = arith.constant 0 : i32
    %c0_i32_0 = arith.constant 0 : i32
    %c0_i32_1 = arith.constant 0 : i32
    return %c0_i32, %c0_i32_0 : i32, i32
  }
  func.func @transform_6(%arg0: i32) -> (i32, i32) {
    %c0_i32 = arith.constant 0 : i32
    %c0_i32_0 = arith.constant 0 : i32
    %c0_i32_1 = arith.constant 0 : i32
    return %c0_i32, %c0_i32_0 : i32, i32
  }
  func.func @transform_7(%arg0: i32) -> (i32, i32) {
    %c0_i32 = arith.constant 0 : i32
    %c0_i32_0 = arith.constant 0 : i32
    %c0_i32_1 = arith.constant 0 : i32
    return %c0_i32, %c0_i32_0 : i32, i32
  }
  func.func @transform_8(%arg0: i32) -> (i32, i32) {
    %c0_i32 = arith.constant 0 : i32
    %c0_i32_0 = arith.constant 0 : i32
    %c0_i32_1 = arith.constant 0 : i32
    return %c0_i32, %c0_i32_0 : i32, i32
  }
  func.func @transform_9(%arg0: i32) -> (i32, i32) {
    %c0_i32 = arith.constant 0 : i32
    %c0_i32_0 = arith.constant 0 : i32
    %c0_i32_1 = arith.constant 0 : i32
    return %c0_i32, %c0_i32_0 : i32, i32
  }
  func.func @transform_10(%arg0: i32) -> (i32, i32, i32, i32) {
    %c0_i32 = arith.constant 0 : i32
    %c0_i32_0 = arith.constant 0 : i32
    %c0_i32_1 = arith.constant 0 : i32
    %c0_i32_2 = arith.constant 0 : i32
    return %arg0, %c0_i32, %c0_i32_0, %c0_i32_1 : i32, i32, i32, i32
  }
}

</mosaic_0001>

<bundles_post_ra>
// kernel: tpu_custom_call.1
= control target key start
LH: loop header
LB: loop body
LE: loop exit
PB: predicated region body
PF: predicated region fallthrough
CT: control target
= control target key end

     0   :  { %s3899_s0 = inlined_call_operand.hbm [shape: f32[2,8,8,128], index: 0, kind: input, shape index: {}]   ;;  %s3900_s1 = inlined_call_operand.hbm [shape: bf16[128,128], index: 1, kind: input, shape index: {}]   ;;  %s3901_s2 = inlined_call_operand.vmem [shape: f32[1,128], index: 2, kind: input, shape index: {}]   ;;  %s3902_s3 = inlined_call_operand.vmem [shape: f32[1,128], index: 3, kind: input, shape index: {}]   ;;  %s3903_s4 = inlined_call_operand.hbm [shape: bf16[1152,128], index: 4, kind: input, shape index: {}]   ;;  %s3904_s5 = inlined_call_operand.vmem [shape: f32[1,128], index: 5, kind: input, shape index: {}]   ;;  %s3905_s6 = inlined_call_operand.vmem [shape: f32[1,128], index: 6, kind: input, shape index: {}]   ;;  %s3906_s7 = inlined_call_operand.hbm [shape: bf16[128,128], index: 7, kind: input, shape index: {}]   ;;  %s3907_s8 = inlined_call_operand.vmem [shape: f32[1,128], index: 8, kind: input, shape index: {}]   ;;  %s3908_s9 = inlined_call_operand.vmem [shape: f32[1,128], index: 9, kind: input, shape index: {}]   ;;  %s3909_s10 = inlined_call_operand.hbm [shape: f32[2,8,8,128], index: 10, kind: output, shape index: {}]  }
   0x1   :  { %3914 = sst [smem:[#allocation26_spill]] %s3900_s1 }
   0x2   :  { %3915 = sst [smem:[#allocation27_spill]] %s3903_s4 }
   0x3   :  { %3916 = sst [smem:[#allocation28_spill]] %s3906_s7 }
   0x4   :  { %15 = vsyncpa [#allocation5], 0 }
   0x5   :  { %17 = vsyncpa [#allocation5 + $0x1], 0 }
   0x6   :  { %18 = vsyncpa [#allocation8], 0 }
   0x7   :  { %19 = vsyncpa [#allocation11], 0 }
   0x8   :  { %20 = vsyncpa [#allocation6], 0 }
   0x9   :  { %22 = vsyncpa [#allocation6 + $0x1], 0  ;;  %s3590_s13 = smov 0   ;;  %s3592_s14 = smov 0  }
   0xa   :  { %s3594_s15 = smov 0   ;;  %s3596_s16 = smov 0  }
   0xb LB: > { %s3611_s17 = sadd.s32 4294967295, %s3520_s16   ;;  %s2539_s18 = sadd.s32 4294967294, %s3520_s16   ;;  %s3520_s16 = sphi %s3596_s16, %s3957_s16   ;;  %s3516_s15 = sphi %s3594_s15, %s3956_s15   ;;  %s3512_s14 = sphi %s3592_s14, %s3955_s14   ;;  %s3508_s13 = sphi %s3590_s13, %s3954_s13  }
   0xc   : > { %p48_p0 = scmp.ne.s32.totalorder %s3512_s14, %s3508_s13  ;;  %p3910_p1 = scmp.eq.s32.totalorder %s3611_s17, 0 }
   0xd   : > { %p267_p3 = scmp.eq.s32.totalorder %s2539_s18, 1  ;;  %p2540_p5 = scmp.ge.s32.totalorder %s3520_s16, 1 }
   0xe   : > { %p3620_p4 = por %p3910_p1, %p48_p0  ;;  %p274_p7 = scmp.lt.s32.totalorder %s3520_s16, 3 }
   0xf   : > { %p3625_p6 = por %p267_p3, %p48_p0  ;;  %s3522_s22 = smov [#allocation7]  }
  0x10   : > { %s3917_s19 = scalar_select %p3620_p4, 1, 0 }
  0x11   : > { %s3918_s20 = scalar_select %p3625_p6, 1, 0 }
  0x12   : > { %p3630_p8 = pnand %p2540_p5, %p274_p7  ;;  %s286_s23 = sshll.u32 %s3522_s22, 4  ;;  %s287_s23 = int_to_ptr.vmem [resolvable:$true] %s286_s23 }
  0x13   : > { %s3523_s25 = smov [#allocation9]   ;;  %s3524_s27 = smov [#allocation10]  }
  0x14   : > { %s3919_s21 = scalar_select %p3630_p8, 1, 0 }
  0x15   : > { %p3135_p9 = pneg %p3630_p8  ;;  %s305_s26 = sshll.u32 %s3523_s25, 4  ;;  %s306_s26 = int_to_ptr.vmem [resolvable:$true] %s305_s26 }
  0x16   : > { %s324_s28 = sshll.u32 %s3524_s27, 4  ;;  %s3353_s29 = scalar_lea.vmem %s287_s23, 1024  ;;  %s325_s28 = int_to_ptr.vmem [resolvable:$true] %s324_s28 }
  0x17   : > { %p3639_p11 = pnand %p3135_p9, %p3910_p1  ;;  %p3354_p13 = scmp.ne.s32.totalorder %s287_s23, %s3353_s29 }
  0x18   : > { %p3361_p5 = scmp.lt.s32.totalorder %s287_s23, %s287_s23  ;;  %p3362_p7 = scmp.lt.s32.totalorder %s3353_s29, %s3353_s29 }
  0x19   : > { %p3344_p12 = pneg %p3639_p11 }
  0x1a   : > { %p3363_p9 = por %p3362_p7, %p3361_p5 }
  0x1b   : > { %p3356_p0 = pnand %p3354_p13, %p3344_p12 }
  0x1d   : > { %p3357_p3 = pneg %p3356_p0 }
  0x1f   : > { %p3364_p10 = pnand %p3363_p9, %p3357_p3 }
  0x21   : > { %3367 = shalt.err (!%p3364_p10)
}
  0x22   : > { %s3525_s30 = smov 64   ;;  %s3526_s11 = smov 4  }
  0x23   : > { %s3921_s1 = sld [smem:[#allocation26_spill]]  ;;  %s3379_s22 = scalar_lea.vmem %s306_s26, 9216 }
  0x24   : > { %p3380_p1 = scmp.ne.s32.totalorder %s306_s26, %s3379_s22  ;;  %p3387_p2 = scmp.lt.s32.totalorder %s306_s26, %s306_s26 }
  0x25   : > { %p3388_p6 = scmp.lt.s32.totalorder %s3379_s22, %s3379_s22 }
  0x26   : > { %p3382_p13 = pnand %p3380_p1, %p3344_p12 }
  0x27   : > { %p3389_p5 = por %p3388_p6, %p3387_p2 }
  0x28   : > { %p3383_p0 = pneg %p3382_p13 }
  0x29   : > { %3138 = dma.hbm_to_vmem [thread:$0]  (!%p3639_p11), %s3921_s1, 1024, %s287_s23, [#allocation8], %s3525_s30, %s3525_s30, %s3526_s11  }
  0x2a   : > { %p3390_p3 = pnand %p3389_p5, %p3383_p0 }
  0x2c   : > { %3393 = shalt.err (!%p3390_p3)
}
  0x2d   : > { %s3922_s4 = sld [smem:[#allocation27_spill]]  ;;  %s3405_s23 = scalar_lea.vmem %s325_s28, 1024 }
  0x2e   : > { %p3406_p10 = scmp.ne.s32.totalorder %s325_s28, %s3405_s23  ;;  %p3413_p9 = scmp.lt.s32.totalorder %s325_s28, %s325_s28 }
  0x2f   : > { %p3414_p13 = scmp.lt.s32.totalorder %s3405_s23, %s3405_s23 }
  0x30   : > { %p3408_p7 = pnand %p3406_p10, %p3344_p12 }
  0x31   : > { %p3415_p4 = por %p3414_p13, %p3413_p9 }
  0x32   : > { %p3409_p1 = pneg %p3408_p7 }
  0x33   : > { %3141 = dma.hbm_to_vmem [thread:$0]  (!%p3639_p11), %s3922_s4, 9216, %s306_s26, [#allocation8], %s3525_s30, %s3525_s30, %s3526_s11  }
  0x34   : > { %p3416_p2 = pnand %p3415_p4, %p3409_p1 }
  0x36   : > { %3419 = shalt.err (!%p3416_p2)
}
  0x37   : > { %s3923_s7 = sld [smem:[#allocation28_spill]]  ;;  %s3670_s26 = sadd.s32 1, %s3520_s16  }
  0x38   : > { %s32_s18 = ssub.s32 %s3520_s16, %s3670_s26  ;;  %s35_s24 = sadd.s32 1, %s3516_s15 }
  0x39   : > { %p33_p4 = scmp.eq.s32.totalorder %s32_s18, 0  ;;  %p42_p6 = scmp.ne.s32.totalorder %s3516_s15, %s3512_s14 }
  0x3a   : > { %p43_p12 = scmp.eq.s32.totalorder %s3520_s16, 0  ;;  %p3156_p0 = scmp.lt.s32.totalorder %s3520_s16, 2 }
  0x3b   : > { %s3680_s22 = scalar_select %p33_p4, %s3516_s15, %s35_s24  }
  0x3c   : > { %p44_p5 = por %p43_p12, %p42_p6  ;;  %p3925_p3 = scmp.eq.s32.totalorder %s3611_s17, 1 }
  0x3d   : > { %3144 = dma.hbm_to_vmem [thread:$0]  (!%p3639_p11), %s3923_s7, 1024, %s325_s28, [#allocation11], %s3525_s30, %s3525_s30, %s3526_s11  }
  0x3e   : > { %3924 = sst [smem:[#allocation17_spill]] %s3680_s22  ;;  %p3684_p10 = por %p3925_p3, %p42_p6 }
  0x3f   : > { %s344_s27 = sand.u32 1, %s3516_s15   ;;  %s2761_s23 = sshll.u32 %s3520_s16, 10 }
  0x40   : > { %s3926_s25 = scalar_select %p3684_p10, 1, 0 }
  0x41   : > { %s2545_s28 = sshll.u32 %s344_s27, 6  ;;  %s3693_s29 = scalar_lea.hbm %s3899_s0, %s2761_s23 }
  0x42   : > { %s348_s12 = scalar_lea.vmem [#allocation4], %s2545_s28  ;;  %p3695_p11 = pnand %p3156_p0, %p44_p5 }
  0x43   : > { %s355_s18 = sshll.u32 %s348_s12, 4  ;;  %s3701_s1 = scalar_lea.sflag [#allocation5], %s344_s27  ;;  %s3699_s18 = int_to_ptr.vmem [resolvable:$true] %s355_s18 }
  0x44   : > { %s3420_s4 = scalar_lea.hbm %s3693_s29, 1024  ;;  %p3422_p1 = pneg %p3695_p11 }
  0x45   : > { %p3421_p7 = scmp.ne.s32.totalorder %s3693_s29, %s3420_s4  ;;  %s3425_s28 = scalar_lea.hbm %s3899_s0, 2048 }
  0x46   : > { %p3426_p2 = scmp.lt.s32.totalorder %s3693_s29, %s3899_s0  ;;  %p3427_p4 = scmp.lt.s32.totalorder %s3425_s28, %s3420_s4 }
  0x47   : > { %p3423_p9 = pnand %p3422_p1, %p3421_p7 }
  0x48   : > { %p3428_p6 = por %p3427_p4, %p3426_p2 }
  0x49   : > { %p3424_p13 = pneg %p3423_p9 }
  0x4b   : > { %p3429_p12 = pnand %p3428_p6, %p3424_p13 }
  0x4d   : > { %3432 = shalt.err (!%p3429_p12)
}
  0x4e   : > { %s3433_s27 = scalar_lea.vmem %s3699_s18, 1024  ;;  %s3527_s7 = smov [#allocation4]  }
  0x4f   : > { %p3434_p0 = scmp.ne.s32.totalorder %s3699_s18, %s3433_s27  ;;  %s3438_s22 = sshll.u32 %s3527_s7, 4  ;;  %s3439_s22 = int_to_ptr.vmem [resolvable:$false] %s3438_s22 }
  0x50   : > { %s3440_s23 = scalar_lea.vmem %s3439_s22, 2048  ;;  %p3441_p7 = scmp.lt.s32.totalorder %s3699_s18, %s3439_s22 }
  0x51   : > { %p3436_p5 = pnand %p3434_p0, %p3422_p1  ;;  %p3442_p9 = scmp.lt.s32.totalorder %s3440_s23, %s3433_s27 }
  0x53   : > { %p3437_p3 = pneg %p3436_p5  ;;  %p3443_p10 = por %p3442_p9, %p3441_p7 }
  0x55   : > { %p3444_p8 = pnand %p3443_p10, %p3437_p3 }
  0x57   : > { %3447 = shalt.err (!%p3444_p8)
}
  0x58   : > { %s3528_s4 = smov 128   ;;  %s3529_s30 = smov 8  }
  0x59   : > { %3148 = dma.hbm_to_vmem [thread:$0]  (!%p3695_p11), %s3693_s29, 1024, %s3699_s18, %s3701_s1, %s3528_s4, %s3528_s4, %s3529_s30  }
  0x5a   : > { %p3928_p1 = scmp.ne.s32.totalorder %s3919_s21, 0 }
  0x5c   : > { %367 = sbr.rel (%p3928_p1) target bundleno = 870 (0x366), region = 60 }
  0x61   : > { %s3725_s7 = sand.u32 1, %s3512_s14   ;;  %p3929_p8 = scmp.ne.s32.totalorder %s3917_s19, 0 }
  0x62   : > { %s2549_s22 = sshll.u32 %s3725_s7, 6  ;;  %s370_s28 = scalar_lea.sflag [#allocation5], %s3725_s7 }
  0x63   : > { %s3731_s11 = scalar_lea.vmem [#allocation4], %s2549_s22 }
  0x64   : > { %3491 = dma.done.wait (%p3929_p8), %s370_s28, 1024  }
  0x65   : > { %3493 = vsyncadd (%p3929_p8), %s370_s28, 4294966272  ;;  %p3930_p10 = scmp.eq.s32.totalorder %s3611_s17, 0 }
  0x67   : > { %3495 = dma.done.wait (%p3930_p10), [#allocation8], 10240   ;;  %p3931_p11 = pmov %p3930_p10 }
  0x68   : > { %p3932_p13 = pmov %p3930_p10 }
  0x69   : > { %3497 = vsyncadd (%p3931_p11), [#allocation8], 4294957056 }
  0x6a   : > { %3499 = dma.done.wait (%p3932_p13), [#allocation11], 1024   ;;  %p3933_p2 = pmov %p3930_p10 }
  0x6b   : > { %v3203_v0 = vld [vmem:[#allocation7 + $0x38] sm:$0xff]   ;;  %v3204_v1 = vld [vmem:[#allocation7 + $0x30] sm:$0xff]   ;;  %v3205_v2 = vld [vmem:[#allocation7 + $0x28] sm:$0xff]   ;;  %v3530_v30 = vmov 0.0   ;;  %v3531_v49 = vmov 0.0|0.0   ;;  %s3835_s1 = scalar_lea.vmem [#allocation12], %s2549_s22 }
  0x6c   : > { %3501 = vsyncadd (%p3933_p2), [#allocation11], 4294966272  ;;  %3031 = vmatprep.subr.bf16.mxu0 %v3203_v0  ;;  %v3206_v3 = vld [vmem:[#allocation7 + $0x20] sm:$0xff]   ;;  %v424_v5 = vld [vmem:[%s3731_s11 + $0x8] sm:$0xff]  ;;  %610 = vst [vmem:[#allocation2 + $0x30] sm:$0x1] %v3530_v30 }
  0x6d   : > { %3032 = vmatpush3.bf16.msra.mxu0 %v3203_v0  ;;  %v423_v4 = vld [vmem:[%s3731_s11] sm:$0xff]  ;;  %v3207_v7 = vld [vmem:[#allocation7 + $0x18] sm:$0xff]   ;;  %v3208_v10 = vld [vmem:[#allocation7 + $0x10] sm:$0xff]   ;;  %618 = vst [vmem:[#allocation2 + $0x39] sm:$0x1] %v3530_v30  ;;  %s2834_s22 = sshll.u32 %s3611_s17, 10 }
  0x6e   : > { %3033 = vmatprep.subr.bf16.mxu0 %v3204_v1  ;;  %v431_v6 = vpack.c.bf16 %v424_v5, %v423_v4  ;;  %v3211_v8 = vld [vmem:[#allocation9 + $0x78] sm:$0xff]   ;;  %v3209_v11 = vld [vmem:[#allocation7 + $0x8] sm:$0xff]   ;;  %v3210_v12 = vld [vmem:[#allocation7] sm:$0xff]   ;;  %602 = vst [vmem:[#allocation2] sm:$0xff] %v3530_v30  ;;  %s2437_s19 = sshll.u32 %s3835_s1, 4  ;;  %s3852_s18 = scalar_lea.hbm %s3909_s10, %s2834_s22  ;;  %s3854_s19 = int_to_ptr.vmem [resolvable:$true] %s2437_s19 }
  0x6f   : > { %v3212_v9 = vld [vmem:[#allocation9 + $0x38] sm:$0xff]   ;;  %2847 = vmatprep.subr.bf16.mxu1 %v3211_v8  ;;  %v425_v13 = vld [vmem:[%s3731_s11 + $0x10] sm:$0xff]  ;;  %v427_v15 = vld [vmem:[%s3731_s11 + $0x20] sm:$0xff]  ;;  %603 = vst [vmem:[#allocation2 + $0x8] sm:$0x3] %v3530_v30  ;;  %s3448_s24 = scalar_lea.vmem %s3854_s19, 1024 }
  0x70   : > { %3047 = vmatprep.mubr.bf16.mxu0 %v431_v6  ;;  %2848 = vmatpush3.bf16.msra.mxu1 %v3212_v9  ;;  %v426_v14 = vld [vmem:[%s3731_s11 + $0x18] sm:$0xff]  ;;  %v428_v16 = vld [vmem:[%s3731_s11 + $0x28] sm:$0xff]  ;;  %v429_v19 = vld [vmem:[%s3731_s11 + $0x30] sm:$0xff]  ;;  %605 = vst [vmem:[#allocation2 + $0x90] sm:$0xff] %v3530_v30  ;;  %p3449_p4 = scmp.ne.s32.totalorder %s3854_s19, %s3448_s24  ;;  %p3950_p6 = scmp.ne.s32.totalorder %s3926_s25, 0 }
  0x71   : > { %3034 = vmatpush3.bf16.msra.mxu0 %v3204_v1  ;;  %v432_v17 = vpack.c.bf16 %v426_v14, %v425_v13  ;;  %v433_v18 = vpack.c.bf16 %v428_v16, %v427_v15  ;;  %v430_v20 = vld [vmem:[%s3731_s11 + $0x38] sm:$0xff]  ;;  %v3213_v22 = vld [vmem:[#allocation9 + $0x70] sm:$0xff]   ;;  %v3217_v26 = vld [vmem:[#allocation9 + $0x68] sm:$0xff]   ;;  %606 = vst [vmem:[#allocation2 + $0x98] sm:$0x3] %v3530_v30  ;;  %s3532_s17 = smov [#allocation12]  }
  0x72   : > { %3035 = vmatprep.subr.bf16.mxu0 %v3205_v2  ;;  %v434_v21 = vpack.c.bf16 %v430_v20, %v429_v19  ;;  %v3215_v23 = vld [vmem:[#allocation9 + $0xf8] sm:$0xff]   ;;  %v3214_v24 = vld [vmem:[#allocation9 + $0x30] sm:$0xff]   ;;  %2849 = vmatprep.subr.bf16.mxu1 %v3213_v22  ;;  %v3218_v28 = vld [vmem:[#allocation9 + $0x28] sm:$0xff]   ;;  %608 = vst [vmem:[#allocation2 + $0x10] sm:$0x1] %v3530_v30  ;;  %p3450_p12 = pnand %p3449_p4, %p3950_p6  ;;  %s3452_s12 = sshll.u32 %s3532_s17, 4  ;;  %s3453_s12 = int_to_ptr.vmem [resolvable:$false] %s3452_s12 }
  0x73   : > { %v3216_v25 = vld [vmem:[#allocation9 + $0xb8] sm:$0xff]   ;;  %v3219_v27 = vld [vmem:[#allocation9 + $0xf0] sm:$0xff]   ;;  %609 = vst [vmem:[#allocation2 + $0x20] sm:$0x1] %v3530_v30  ;;  %611 = vst [vmem:[#allocation2 + $0x40] sm:$0x1] %v3530_v30  ;;  %p3455_p5 = scmp.lt.s32.totalorder %s3854_s19, %s3453_s12 }
  0x74   : > { %2850 = vmatpush3.bf16.msra.mxu1 %v3214_v24  ;;  %v3220_v29 = vld [vmem:[#allocation9 + $0xb0] sm:$0xff]   ;;  %612 = vst [vmem:[#allocation2 + $0x50] sm:$0x1] %v3530_v30  ;;  %613 = vst [vmem:[#allocation2 + $0x60] sm:$0x1] %v3530_v30  ;;  %v3221_v31 = vld [vmem:[#allocation9 + $0x60] sm:$0xff]   ;;  %p3451_p0 = pneg %p3450_p12 }
  0x75   : > { %3036 = vmatpush3.bf16.msra.mxu0 %v3205_v2  ;;  %2851 = vmatprep.subr.bf16.mxu1 %v3217_v26  ;;  %614 = vst [vmem:[#allocation2 + $0x70] sm:$0x1] %v3530_v30  ;;  %615 = vst [vmem:[#allocation2 + $0x80] sm:$0x1] %v3530_v30  ;;  %v3223_v32 = vld [vmem:[#allocation9 + $0xe8] sm:$0xff]   ;;  %v3222_v33 = vld [vmem:[#allocation9 + $0x20] sm:$0xff]  }
  0x76   : > { %3037 = vmatprep.subr.bf16.mxu0 %v3206_v3  ;;  %616 = vst [vmem:[#allocation2 + $0x19] sm:$0x1] %v3530_v30  ;;  %617 = vst [vmem:[#allocation2 + $0x29] sm:$0x1] %v3530_v30  ;;  %v3224_v34 = vld [vmem:[#allocation9 + $0xa8] sm:$0xff]   ;;  %v3225_v35 = vld [vmem:[#allocation9 + $0x58] sm:$0xff]  }
  0x77   : > { %619 = vst [vmem:[#allocation2 + $0x49] sm:$0x1] %v3530_v30  ;;  %620 = vst [vmem:[#allocation2 + $0x59] sm:$0x1] %v3530_v30  ;;  %v3227_v36 = vld [vmem:[#allocation9 + $0xe0] sm:$0xff]   ;;  %v3226_v37 = vld [vmem:[#allocation9 + $0x18] sm:$0xff]  }
  0x78   : > { %621 = vst [vmem:[#allocation2 + $0x69] sm:$0x1] %v3530_v30  ;;  %622 = vst [vmem:[#allocation2 + $0x79] sm:$0x1] %v3530_v30  ;;  %2852 = vmatpush3.bf16.msra.mxu1 %v3218_v28  ;;  %v3228_v38 = vld [vmem:[#allocation9 + $0xa0] sm:$0xff]   ;;  %v3229_v39 = vld [vmem:[#allocation9 + $0x50] sm:$0xff]  }
  0x79   : > { %3038 = vmatpush3.bf16.msra.mxu0 %v3206_v3  ;;  %623 = vst [vmem:[#allocation2 + $0x89] sm:$0x1] %v3530_v30  ;;  %2853 = vmatprep.subr.bf16.mxu1 %v3221_v31  ;;  %v3231_v40 = vld [vmem:[#allocation9 + $0xd8] sm:$0xff]   ;;  %v3230_v41 = vld [vmem:[#allocation9 + $0x10] sm:$0xff]   ;;  %v680_v43 = vld [vmem:[#allocation2 + $0x1] sm:$0xff]  ;;  %s3454_s27 = scalar_lea.vmem %s3453_s12, 2048 }
  0x7a   : > { %3039 = vmatprep.subr.bf16.mxu0 %v3207_v7  ;;  %v3232_v42 = vld [vmem:[#allocation9 + $0x98] sm:$0xff]   ;;  %v2770_v44 = vpack.c.bf16 %v680_v43, %v680_v43  ;;  %v728_v45 = vld [vmem:[#allocation2 + $0x2] sm:$0xff]  ;;  %v3235_v48 = vld [vmem:[#allocation9 + $0xd0] sm:$0xff]   ;;  %672 = vst [vmem:[#allocation3] sm:$0xf] %v3531_v49  ;;  %p3456_p3 = scmp.lt.s32.totalorder %s3454_s27, %s3448_s24 }
  0x7b   : > { %v2778_v46 = vpack.c.bf16 %v728_v45, %v728_v45  ;;  %v3233_v47 = vld [vmem:[#allocation9 + $0x48] sm:$0xff]   ;;  %968 = vst [vmem:[#allocation3 + $0x114] sm:$0xf] %v3531_v49  ;;  %v3236_v51 = vld [vmem:[#allocation9 + $0x90] sm:$0xff]   ;;  %v3237_v52 = vld [vmem:[#allocation9 + $0x40] sm:$0xff]  }
  0x7c   : > { %2854 = vmatpush3.bf16.msra.mxu1 %v3222_v33  ;;  %720 = vst [vmem:[#allocation3 + $0x4] sm:$0xf] %v2770_v44  ;;  %v3234_v50 = vld [vmem:[#allocation9 + $0x8] sm:$0xff]   ;;  %v3238_v54 = vld [vmem:[#allocation9] sm:$0xff]   ;;  %v3244_v56 = vld [vmem:[#allocation9 + $0x178] sm:$0xff]   ;;  %p3457_p7 = por %p3456_p3, %p3455_p5 }
  0x7d   : > { %3040 = vmatpush3.bf16.msra.mxu0 %v3207_v7  ;;  %2855 = vmatprep.subr.bf16.mxu1 %v3225_v35  ;;  %768 = vst [vmem:[#allocation3 + $0x8] sm:$0xf] %v2778_v46  ;;  %v3239_v53 = vld [vmem:[#allocation9 + $0xc8] sm:$0xff]   ;;  %v3245_v57 = vld [vmem:[#allocation9 + $0xc0] sm:$0xff]   ;;  %v3255_v59 = vld [vmem:[#allocation9 + $0x1f8] sm:$0xff]  }
  0x7e   : > { %3041 = vmatprep.subr.bf16.mxu0 %v3208_v10  ;;  %v3240_v55 = vld [vmem:[#allocation9 + $0x88] sm:$0xff]   ;;  %v3247_v58 = vld [vmem:[#allocation9 + $0x80] sm:$0xff]   ;;  %v976_v60 = vld [vmem:[#allocation2 + $0x91] sm:$0xff]  ;;  %p3458_p9 = pnand %p3457_p7, %p3451_p0 }
  0x7f   : > { %v2825_v61 = vpack.c.bf16 %v976_v60, %v976_v60  ;;  %v1024_v62 = vld [vmem:[#allocation2 + $0x92] sm:$0xff]  ;;  %v2562_v0 = vld [vmem:[%s3901_s2] ss:$0 sm:$0xff] }
  0x80   : > { %2856 = vmatpush3.bf16.msra.mxu1 %v3226_v37  ;;  %v2833_v63 = vpack.c.bf16 %v1024_v62, %v1024_v62  ;;  %v3759_v2 = vld [vmem:[%s3902_s3] ss:$0 sm:$0xff] }
  0x81   : > { %3042 = vmatpush3.bf16.msra.mxu0 %v3208_v10  ;;  %2857 = vmatprep.subr.bf16.mxu1 %v3229_v39  ;;  %1016 = vst [vmem:[#allocation3 + $0x118] sm:$0xf] %v2825_v61 }
  0x82   : > { %3043 = vmatprep.subr.bf16.mxu0 %v3209_v11  ;;  %1064 = vst [vmem:[#allocation3 + $0x11c] sm:$0xf] %v2833_v63 }
  0x84   : > { %2858 = vmatpush3.bf16.msra.mxu1 %v3230_v41 }
  0x85   : > { %3044 = vmatpush3.bf16.msra.mxu0 %v3209_v11  ;;  %2859 = vmatprep.subr.bf16.mxu1 %v3233_v47 }
  0x86   : > { %3045 = vmatprep.subr.bf16.mxu0 %v3210_v12 }
  0x88   : > { %2860 = vmatpush3.bf16.msra.mxu1 %v3234_v50 }
  0x89   : > { %3046 = vmatpush3.bf16.msra.mxu0 %v3210_v12  ;;  %2861 = vmatprep.subr.bf16.mxu1 %v3237_v52 }
  0x8a   : > { %2887 = vmatprep.subr.bf16.mxu0 %v3215_v23 }
  0x8c   : > { %3048 = vmatmul.mubr.bf16.vlgmr.msra.gmra.mxu0 %v432_v17  ;;  %2862 = vmatpush3.bf16.msra.mxu1 %v3238_v54 }
  0x8d   : > { %3051 = vmatprep.mubr.bf16.mxu0 %v433_v18  ;;  %2888 = vmatpush3.bf16.msra.mxu0 %v3216_v25 }
  0x8e   : > { %2889 = vmatprep.subr.bf16.mxu0 %v3219_v27  ;;  %2927 = vmatprep.subr.bf16.mxu1 %v3244_v56 }
  0x91   : > { %2890 = vmatpush3.bf16.msra.mxu0 %v3220_v29 }
  0x92   : > { %2891 = vmatprep.subr.bf16.mxu0 %v3223_v32 }
  0x94   : > { %3052 = vmatmul.mubr.bf16.gmra.mxu0 %v434_v21 }
  0x95   : > { %2892 = vmatpush3.bf16.msra.mxu0 %v3224_v34 }
  0x96   : > { %2893 = vmatprep.subr.bf16.mxu0 %v3227_v36 }
  0x99   : > { %2894 = vmatpush3.bf16.msra.mxu0 %v3228_v38 }
  0x9a   : > { %2895 = vmatprep.subr.bf16.mxu0 %v3231_v40 }
  0x9d   : > { %2896 = vmatpush3.bf16.msra.mxu0 %v3232_v42 }
  0x9e   : > { %2897 = vmatprep.subr.bf16.mxu0 %v3235_v48 }
  0xa1   : > { %2898 = vmatpush3.bf16.msra.mxu0 %v3236_v51 }
  0xa2   : > { %2899 = vmatprep.subr.bf16.mxu0 %v3239_v53 }
  0xa5   : > { %2900 = vmatpush3.bf16.msra.mxu0 %v3240_v55 }
  0xa6   : > { %2901 = vmatprep.subr.bf16.mxu0 %v3245_v57 }
  0xa9   : > { %2902 = vmatpush3.bf16.msra.mxu0 %v3247_v58 }
  0xaa   : > { %2967 = vmatprep.subr.bf16.mxu0 %v3255_v59 }
 0x14c   : > { %v3049_v1 = vpop.f32.mrf.mxu0 }
 0x14d   : > { %v573_v3 = vmul.f32 %v3049_v1, %v2562_v0 }
 0x14e   : > { %v533_v4 = vpop.f32.mrf.mxu0 }
 0x14f   : > { %v588_v5 = vadd.f32 %v3759_v2, %v573_v3  ;;  %v571_v6 = vmul.f32 %v2562_v0, %v533_v4  ;;  %v3253_v3 = vld [vmem:[#allocation9 + $0x170] sm:$0xff]  }
 0x150   : > { %v3050_v7 = vpop.f32.mrf.mxu0 }
 0x151   : > { %v596_v8 = vmax.f32 %v588_v5, 0.0  ;;  %v586_v9 = vadd.f32 %v3759_v2, %v571_v6  ;;  %v574_v10 = vmul.f32 %v3050_v7, %v2562_v0 }
 0x152   : > { %v536_v11 = vpop.f32.mrf.mxu0 }
 0x153   : > { %626 = vst [vmem:[#allocation2 + $0x31] sm:$0xff] %v596_v8  ;;  %v2773_v12 = vpack.c.bf16 %v596_v8, %v596_v8  ;;  %v594_v13 = vmax.f32 %v586_v9, 0.0  ;;  %v589_v14 = vadd.f32 %v3759_v2, %v574_v10  ;;  %v572_v15 = vmul.f32 %v2562_v0, %v536_v11  ;;  %v3254_v10 = vld [vmem:[#allocation9 + $0x130] sm:$0xff]  }
 0x154   : > { %v3053_v16 = vpop.f32.mrf.mxu0 }
 0x155   : > { %723 = vst [vmem:[#allocation3 + $0x70] sm:$0xf] %v2773_v12  ;;  %866 = vst [vmem:[#allocation3 + $0x58] sm:$0xf] %v2773_v12  ;;  %v2794_v17 = vpack.c.bf16 %v594_v13, %v594_v13  ;;  %v597_v18 = vmax.f32 %v589_v14, 0.0  ;;  %v587_v19 = vadd.f32 %v3759_v2, %v572_v15  ;;  %v577_v20 = vmul.f32 %v3053_v16, %v2562_v0 }
 0x156   : > { %1010 = vst [vmem:[#allocation3 + $0x40] sm:$0xf] %v2773_v12  ;;  %624 = vst [vmem:[#allocation2 + $0x11] sm:$0xff] %v594_v13  ;;  %v549_v21 = vpop.f32.mrf.mxu0  ;;  %v3258_v13 = vld [vmem:[#allocation9 + $0x1b8] sm:$0xff]  }
 0x157   : > { %864 = vst [vmem:[#allocation3 + $0x10] sm:$0xf] %v2794_v17  ;;  %627 = vst [vmem:[#allocation2 + $0x41] sm:$0xff] %v597_v18  ;;  %v2774_v22 = vpack.c.bf16 %v597_v18, %v597_v18  ;;  %v595_v23 = vmax.f32 %v587_v19, 0.0  ;;  %v592_v24 = vadd.f32 %v3759_v2, %v577_v20  ;;  %v575_v25 = vmul.f32 %v2562_v0, %v549_v21  ;;  %v3259_v19 = vld [vmem:[#allocation9 + $0x168] sm:$0xff]   ;;  %v3262_v21 = vld [vmem:[#allocation9 + $0x1f0] sm:$0xff]  }
 0x158   : > { %721 = vst [vmem:[#allocation3 + $0x28] sm:$0xf] %v2794_v17  ;;  %v3054_v26 = vpop.f32.mrf.mxu0  ;;  %v3261_v20 = vld [vmem:[#allocation9 + $0x128] sm:$0xff]  }
 0x159   : > { %724 = vst [vmem:[#allocation3 + $0x94] sm:$0xf] %v2774_v22  ;;  %867 = vst [vmem:[#allocation3 + $0x7c] sm:$0xf] %v2774_v22  ;;  %v2772_v27 = vpack.c.bf16 %v595_v23, %v595_v23  ;;  %v600_v28 = vmax.f32 %v592_v24, 0.0  ;;  %v590_v29 = vadd.f32 %v3759_v2, %v575_v25  ;;  %v578_v30 = vmul.f32 %v3054_v26, %v2562_v0  ;;  %v3266_v25 = vld [vmem:[#allocation9 + $0x160] sm:$0xff]  }
 0x15a   : > { %1011 = vst [vmem:[#allocation3 + $0x64] sm:$0xf] %v2774_v22  ;;  %625 = vst [vmem:[#allocation2 + $0x21] sm:$0xff] %v595_v23  ;;  %v635_v31 = vld [vmem:[#allocation2 + $0x30] sm:$0xff]  ;;  %v552_v33 = vpop.f32.mrf.mxu0 }
 0x15b   : > { %v731_v32 = vld [vmem:[#allocation2 + $0x32] sm:$0xff]  ;;  %v2765_v34 = vpack.c.bf16 %v635_v31, %v635_v31  ;;  %722 = vst [vmem:[#allocation3 + $0x4c] sm:$0xf] %v2772_v27  ;;  %865 = vst [vmem:[#allocation3 + $0x34] sm:$0xf] %v2772_v27  ;;  %v2777_v36 = vpack.c.bf16 %v600_v28, %v600_v28  ;;  %v598_v37 = vmax.f32 %v590_v29, 0.0  ;;  %v593_v40 = vadd.f32 %v3759_v2, %v578_v30 }
 0x15c   : > { %v2781_v35 = vpack.c.bf16 %v731_v32, %v731_v32  ;;  %1009 = vst [vmem:[#allocation3 + $0x1c] sm:$0xf] %v2772_v27  ;;  %630 = vst [vmem:[#allocation2 + $0x71] sm:$0xff] %v600_v28  ;;  %v576_v41 = vmul.f32 %v2562_v0, %v552_v33  ;;  %v3246_v0 = vld [vmem:[#allocation9 + $0x138] sm:$0xff]   ;;  %v3265_v23 = vld [vmem:[#allocation9 + $0x1b0] sm:$0xff]  }
 0x15d   : > { %v729_v38 = vld [vmem:[#allocation2 + $0x12] sm:$0xff]  ;;  %675 = vst [vmem:[#allocation3 + $0x6c] sm:$0xf] %v2765_v34  ;;  %818 = vst [vmem:[#allocation3 + $0x54] sm:$0xf] %v2765_v34  ;;  %v2775_v44 = vpack.c.bf16 %v598_v37, %v598_v37  ;;  %v601_v47 = vmax.f32 %v593_v40, 0.0 }
 0x15e   : > { %v776_v39 = vld [vmem:[#allocation2 + $0x10] sm:$0xff]  ;;  %771 = vst [vmem:[#allocation3 + $0x74] sm:$0xf] %v2781_v35  ;;  %914 = vst [vmem:[#allocation3 + $0x5c] sm:$0xf] %v2781_v35  ;;  %v2779_v42 = vpack.c.bf16 %v729_v38, %v729_v38  ;;  %v636_v45 = vld [vmem:[#allocation2 + $0x40] sm:$0xff]  ;;  %v591_v48 = vadd.f32 %v3759_v2, %v576_v41 }
 0x15f   : > { %962 = vst [vmem:[#allocation3 + $0x3c] sm:$0xf] %v2765_v34  ;;  %1058 = vst [vmem:[#allocation3 + $0x44] sm:$0xf] %v2781_v35  ;;  %v2786_v43 = vpack.c.bf16 %v776_v39, %v776_v39  ;;  %v732_v46 = vld [vmem:[#allocation2 + $0x42] sm:$0xff]  ;;  %v2766_v49 = vpack.c.bf16 %v636_v45, %v636_v45  ;;  %v2801_v53 = vpack.c.bf16 %v601_v47, %v601_v47  ;;  %v3273_v30 = vld [vmem:[#allocation9 + $0x158] sm:$0xff]  }
 0x160   : > { %727 = vst [vmem:[#allocation3 + $0x100] sm:$0xf] %v2777_v36  ;;  %870 = vst [vmem:[#allocation3 + $0xe8] sm:$0xf] %v2777_v36  ;;  %v2782_v50 = vpack.c.bf16 %v732_v46, %v732_v46  ;;  %v599_v54 = vmax.f32 %v591_v48, 0.0  ;;  %v3269_v27 = vld [vmem:[#allocation9 + $0x1e8] sm:$0xff]  }
 0x161   : > { %1014 = vst [vmem:[#allocation3 + $0xd0] sm:$0xf] %v2777_v36  ;;  %628 = vst [vmem:[#allocation2 + $0x51] sm:$0xff] %v598_v37  ;;  %v634_v51 = vld [vmem:[#allocation2 + $0x20] sm:$0xff]  ;;  %v3272_v29 = vld [vmem:[#allocation9 + $0x1a8] sm:$0xff]  }
 0x162   : > { %769 = vst [vmem:[#allocation3 + $0x2c] sm:$0xf] %v2779_v42  ;;  %816 = vst [vmem:[#allocation3 + $0xc] sm:$0xf] %v2786_v43  ;;  %v730_v52 = vld [vmem:[#allocation2 + $0x22] sm:$0xff]  ;;  %v2764_v55 = vpack.c.bf16 %v634_v51, %v634_v51  ;;  %v2776_v59 = vpack.c.bf16 %v599_v54, %v599_v54  ;;  %v3275_v34 = vld [vmem:[#allocation9 + $0x118] sm:$0xff]  }
 0x163   : > { %912 = vst [vmem:[#allocation3 + $0x14] sm:$0xf] %v2779_v42  ;;  %725 = vst [vmem:[#allocation3 + $0xb8] sm:$0xf] %v2775_v44  ;;  %v2780_v56 = vpack.c.bf16 %v730_v52, %v730_v52  ;;  %v639_v57 = vld [vmem:[#allocation2 + $0x70] sm:$0xff]  ;;  %v3268_v28 = vld [vmem:[#allocation9 + $0x120] sm:$0xff]  }
 0x164   : > { %868 = vst [vmem:[#allocation3 + $0xa0] sm:$0xf] %v2775_v44  ;;  %1012 = vst [vmem:[#allocation3 + $0x88] sm:$0xf] %v2775_v44  ;;  %v735_v58 = vld [vmem:[#allocation2 + $0x72] sm:$0xff]  ;;  %v2769_v60 = vpack.c.bf16 %v639_v57, %v639_v57  ;;  %v3276_v32 = vld [vmem:[#allocation9 + $0x1e0] sm:$0xff]  }
 0x165   : > { %673 = vst [vmem:[#allocation3 + $0x24] sm:$0xf] %v2786_v43  ;;  %631 = vst [vmem:[#allocation2 + $0x81] sm:$0xff] %v601_v47  ;;  %v2785_v61 = vpack.c.bf16 %v735_v58, %v735_v58  ;;  %v3243_v5 = vld [vmem:[#allocation3 + $0x4] ss:$36 sps:$4 sm:$0xff]   ;;  %v3280_v36 = vld [vmem:[#allocation9 + $0x150] sm:$0xff]  }
 0x166   : > { %1059 = vst [vmem:[#allocation3 + $0x68] sm:$0xf] %v2782_v50  ;;  %676 = vst [vmem:[#allocation3 + $0x90] sm:$0xf] %v2766_v49  ;;  %1897 = vmatprep.mubr.bf16.mxu1 %v3243_v5  ;;  %v3248_v16 = vld [vmem:[#allocation3 + $0x4c] ss:$36 sps:$4 sm:$0xff]  }
 0x167   : > { %772 = vst [vmem:[#allocation3 + $0x98] sm:$0xf] %v2782_v50  ;;  %819 = vst [vmem:[#allocation3 + $0x78] sm:$0xf] %v2766_v49  ;;  %v3279_v35 = vld [vmem:[#allocation9 + $0x1a0] sm:$0xff]   ;;  %v3283_v39 = vld [vmem:[#allocation9 + $0x1d8] sm:$0xff]  }
 0x168   : > { %915 = vst [vmem:[#allocation3 + $0x80] sm:$0xf] %v2782_v50  ;;  %963 = vst [vmem:[#allocation3 + $0x60] sm:$0xf] %v2766_v49  ;;  %v637_v62 = vld [vmem:[#allocation2 + $0x50] sm:$0xff]  ;;  %v3286_v41 = vld [vmem:[#allocation9 + $0x198] sm:$0xff]  }
 0x169   : > { %871 = vst [vmem:[#allocation3 + $0x10c] sm:$0xf] %v2801_v53  ;;  %1015 = vst [vmem:[#allocation3 + $0xf4] sm:$0xf] %v2801_v53  ;;  %v733_v63 = vld [vmem:[#allocation2 + $0x52] sm:$0xff]  ;;  %v2767_v1 = vpack.c.bf16 %v637_v62, %v637_v62  ;;  %v3287_v42 = vld [vmem:[#allocation9 + $0x148] sm:$0xff]  }
 0x16a   : > { %629 = vst [vmem:[#allocation2 + $0x61] sm:$0xff] %v599_v54  ;;  %674 = vst [vmem:[#allocation3 + $0x48] sm:$0xf] %v2764_v55  ;;  %v2783_v2 = vpack.c.bf16 %v733_v63, %v733_v63  ;;  %v3250_v17 = vld [vmem:[#allocation3 + $0x8] ss:$36 sps:$4 sm:$0xff]   ;;  %v3282_v40 = vld [vmem:[#allocation9 + $0x110] sm:$0xff]  }
 0x16b   : > { %770 = vst [vmem:[#allocation3 + $0x50] sm:$0xf] %v2780_v56  ;;  %817 = vst [vmem:[#allocation3 + $0x30] sm:$0xf] %v2764_v55  ;;  %v3263_v26 = vld [vmem:[#allocation3 + $0x94] ss:$36 sps:$4 sm:$0xff]  }
 0x16c   : > { %913 = vst [vmem:[#allocation3 + $0x38] sm:$0xf] %v2780_v56  ;;  %961 = vst [vmem:[#allocation3 + $0x18] sm:$0xf] %v2764_v55  ;;  %v3241_v4 = vld [vmem:[#allocation3] ss:$36 sps:$4 sm:$0xff]  }
 0x16d   : > { %1057 = vst [vmem:[#allocation3 + $0x20] sm:$0xf] %v2780_v56  ;;  %726 = vst [vmem:[#allocation3 + $0xdc] sm:$0xf] %v2776_v59  ;;  %v783_v6 = vld [vmem:[#allocation2 + $0x80] sm:$0xff]  ;;  %1898 = vmatmul.mubr.bf16.vlgmr.msra.gmra.mxu1 %v3241_v4  ;;  %v3290_v43 = vld [vmem:[#allocation9 + $0x1d0] sm:$0xff]  }
 0x16e   : > { %869 = vst [vmem:[#allocation3 + $0xc4] sm:$0xf] %v2776_v59  ;;  %1013 = vst [vmem:[#allocation3 + $0xac] sm:$0xf] %v2776_v59  ;;  %v879_v7 = vld [vmem:[#allocation2 + $0x82] sm:$0xff]  ;;  %v2793_v8 = vpack.c.bf16 %v783_v6, %v783_v6  ;;  %2928 = vmatpush3.bf16.msra.mxu1 %v3246_v0  ;;  %1905 = vmatprep.mubr.bf16.mxu1 %v3248_v16  ;;  %v3294_v48 = vld [vmem:[#allocation9 + $0x190] sm:$0xff]  }
 0x16f   : > { %679 = vst [vmem:[#allocation3 + $0xfc] sm:$0xf] %v2769_v60  ;;  %775 = vst [vmem:[#allocation3 + $0x104] sm:$0xf] %v2785_v61  ;;  %v2809_v9 = vpack.c.bf16 %v879_v7, %v879_v7  ;;  %2929 = vmatprep.subr.bf16.mxu1 %v3253_v3  ;;  %v3256_v22 = vld [vmem:[#allocation3 + $0x54] ss:$36 sps:$4 sm:$0xff]  }
 0x170   : > { %822 = vst [vmem:[#allocation3 + $0xe4] sm:$0xf] %v2769_v60  ;;  %918 = vst [vmem:[#allocation3 + $0xec] sm:$0xf] %v2785_v61  ;;  %v3289_v46 = vld [vmem:[#allocation9 + $0x108] sm:$0xff]   ;;  %v3295_v49 = vld [vmem:[#allocation9 + $0x140] sm:$0xff]  }
 0x171   : > { %966 = vst [vmem:[#allocation3 + $0xcc] sm:$0xf] %v2769_v60  ;;  %1062 = vst [vmem:[#allocation3 + $0xd4] sm:$0xf] %v2785_v61  ;;  %v638_v11 = vld [vmem:[#allocation2 + $0x60] sm:$0xff]  ;;  %v3298_v51 = vld [vmem:[#allocation9 + $0x1c8] sm:$0xff]  }
 0x172   : > { %1060 = vst [vmem:[#allocation3 + $0x8c] sm:$0xf] %v2783_v2  ;;  %677 = vst [vmem:[#allocation3 + $0xb4] sm:$0xf] %v2767_v1  ;;  %v734_v12 = vld [vmem:[#allocation2 + $0x62] sm:$0xff]  ;;  %v2768_v14 = vpack.c.bf16 %v638_v11, %v638_v11  ;;  %2930 = vmatpush3.bf16.msra.mxu1 %v3254_v10  ;;  %v3303_v55 = vld [vmem:[#allocation9 + $0x238] sm:$0xff]  }
 0x173   : > { %773 = vst [vmem:[#allocation3 + $0xbc] sm:$0xf] %v2783_v2  ;;  %820 = vst [vmem:[#allocation3 + $0x9c] sm:$0xf] %v2767_v1  ;;  %v2784_v15 = vpack.c.bf16 %v734_v12, %v734_v12  ;;  %v3252_v18 = vld [vmem:[#allocation3 + $0xc] ss:$36 sps:$4 sm:$0xff]   ;;  %2931 = vmatprep.subr.bf16.mxu1 %v3259_v19 }
 0x174   : > { %916 = vst [vmem:[#allocation3 + $0xa4] sm:$0xf] %v2783_v2  ;;  %964 = vst [vmem:[#allocation3 + $0x84] sm:$0xf] %v2767_v1  ;;  %1962 = vmatprep.mubr.bf16.mxu0 %v3252_v18  ;;  %v3260_v24 = vld [vmem:[#allocation3 + $0x48] ss:$36 sps:$4 sm:$0xff]  }
 0x175   : > { %823 = vst [vmem:[#allocation3 + $0x108] sm:$0xf] %v2793_v8  ;;  %919 = vst [vmem:[#allocation3 + $0x110] sm:$0xf] %v2809_v9  ;;  %1963 = vmatmul.mubr.bf16.vlgmr.msra.gmra.mxu0 %v3250_v17  ;;  %1906 = vmatmul.mubr.bf16.gmra.mxu1 %v3260_v24  ;;  %v3267_v31 = vld [vmem:[#allocation3 + $0x50] ss:$36 sps:$4 sm:$0xff]  }
 0x176   : > { %967 = vst [vmem:[#allocation3 + $0xf0] sm:$0xf] %v2793_v8  ;;  %1063 = vst [vmem:[#allocation3 + $0xf8] sm:$0xf] %v2809_v9  ;;  %1970 = vmatprep.mubr.bf16.mxu0 %v3256_v22  ;;  %2968 = vmatpush3.bf16.msra.mxu0 %v3258_v13  ;;  %v3277_v38 = vld [vmem:[#allocation3 + $0xdc] ss:$36 sps:$4 sm:$0xff]  }
 0x177   : > { %678 = vst [vmem:[#allocation3 + $0xd8] sm:$0xf] %v2768_v14  ;;  %774 = vst [vmem:[#allocation3 + $0xe0] sm:$0xf] %v2784_v15  ;;  %2969 = vmatprep.subr.bf16.mxu0 %v3262_v21  ;;  %2932 = vmatpush3.bf16.msra.mxu1 %v3261_v20  ;;  %v3293_v50 = vld [vmem:[#allocation3 + $0x14] ss:$36 sps:$4 sm:$0xff]  }
 0x178   : > { %821 = vst [vmem:[#allocation3 + $0xc0] sm:$0xf] %v2768_v14  ;;  %917 = vst [vmem:[#allocation3 + $0xc8] sm:$0xf] %v2784_v15  ;;  %1913 = vmatprep.mubr.bf16.mxu1 %v3263_v26  ;;  %2933 = vmatprep.subr.bf16.mxu1 %v3266_v25  ;;  %v3297_v52 = vld [vmem:[#allocation9 + $0x100] sm:$0xff]   ;;  %v3299_v53 = vld [vmem:[#allocation9 + $0x188] sm:$0xff]  }
 0x179   : > { %965 = vst [vmem:[#allocation3 + $0xa8] sm:$0xf] %v2768_v14  ;;  %1061 = vst [vmem:[#allocation3 + $0xb0] sm:$0xf] %v2784_v15  ;;  %v3274_v37 = vld [vmem:[#allocation3 + $0x90] ss:$36 sps:$4 sm:$0xff]  }
 0x17a   : > { %2970 = vmatpush3.bf16.msra.mxu0 %v3265_v23  ;;  %v3281_v44 = vld [vmem:[#allocation3 + $0x98] ss:$36 sps:$4 sm:$0xff]   ;;  %v3304_v56 = vld [vmem:[#allocation9 + $0x1c0] sm:$0xff]   ;;  %v3291_v58 = vld [vmem:[#allocation3 + $0x10] ss:$36 sps:$4 sm:$0xff]  }
 0x17b   : > { %2971 = vmatprep.subr.bf16.mxu0 %v3269_v27  ;;  %2934 = vmatpush3.bf16.msra.mxu1 %v3268_v28  ;;  %v3302_v57 = vld [vmem:[#allocation3 + $0x1c] ss:$36 sps:$4 sm:$0xff]   ;;  %v3308_v60 = vld [vmem:[#allocation9 + $0x230] sm:$0xff]   ;;  %v3311_v62 = vld [vmem:[#allocation9 + $0x228] sm:$0xff]  }
 0x17c   : > { %2935 = vmatprep.subr.bf16.mxu1 %v3273_v30  ;;  %v3284_v45 = vld [vmem:[#allocation3 + $0xe4] ss:$36 sps:$4 sm:$0xff]   ;;  %v3305_v61 = vld [vmem:[#allocation3 + $0x5c] ss:$36 sps:$4 sm:$0xff]   ;;  %v3317_v6 = vld [vmem:[#allocation3 + $0xac] ss:$36 sps:$4 sm:$0xff]  }
 0x17d   : > { %1971 = vmatmul.mubr.bf16.gmra.mxu0 %v3267_v31  ;;  %1914 = vmatmul.mubr.bf16.gmra.mxu1 %v3274_v37  ;;  %v3307_v59 = vld [vmem:[#allocation9 + $0x180] sm:$0xff]   ;;  %v3300_v63 = vld [vmem:[#allocation3 + $0x18] ss:$36 sps:$4 sm:$0xff]   ;;  %v3323_v8 = vld [vmem:[#allocation9 + $0x210] sm:$0xff]  }
 0x17e   : > { %2972 = vmatpush3.bf16.msra.mxu0 %v3272_v29  ;;  %1921 = vmatprep.mubr.bf16.mxu1 %v3277_v38  ;;  %v3288_v47 = vld [vmem:[#allocation3 + $0xd8] ss:$36 sps:$4 sm:$0xff]   ;;  %v3296_v54 = vld [vmem:[#allocation3 + $0xe0] ss:$36 sps:$4 sm:$0xff]   ;;  %v3321_v9 = vld [vmem:[#allocation3 + $0xec] ss:$36 sps:$4 sm:$0xff]  }
 0x17f   : > { %v3270_v33 = vld [vmem:[#allocation3 + $0x9c] ss:$36 sps:$4 sm:$0xff]   ;;  %2973 = vmatprep.subr.bf16.mxu0 %v3276_v32  ;;  %2936 = vmatpush3.bf16.msra.mxu1 %v3275_v34  ;;  %v3309_v0 = vld [vmem:[#allocation3 + $0x64] ss:$36 sps:$4 sm:$0xff]   ;;  %v1102_v11 = vld [vmem:[#allocation3 + $0x10c] sm:$0xff] }
 0x180   : > { %1978 = vmatprep.mubr.bf16.mxu0 %v3270_v33  ;;  %2937 = vmatprep.subr.bf16.mxu1 %v3280_v36  ;;  %v3312_v1 = vld [vmem:[#allocation3 + $0x58] ss:$36 sps:$4 sm:$0xff]   ;;  %v3315_v2 = vld [vmem:[#allocation9 + $0x220] sm:$0xff]   ;;  %v3327_v10 = vld [vmem:[#allocation9 + $0x208] sm:$0xff]  }
 0x181   : > { %v3313_v3 = vld [vmem:[#allocation3 + $0xa4] ss:$36 sps:$4 sm:$0xff]   ;;  %v3319_v4 = vld [vmem:[#allocation9 + $0x218] sm:$0xff]   ;;  %v3330_v18 = vld [vmem:[#allocation3 + $0xf0] ss:$36 sps:$4 sm:$0xff]  }
 0x182   : > { %2974 = vmatpush3.bf16.msra.mxu0 %v3279_v35  ;;  %v3316_v5 = vld [vmem:[#allocation3 + $0x60] ss:$36 sps:$4 sm:$0xff]   ;;  %v3324_v12 = vld [vmem:[#allocation3 + $0xa8] ss:$36 sps:$4 sm:$0xff]   ;;  %v3325_v13 = vld [vmem:[#allocation3 + $0xf4] ss:$36 sps:$4 sm:$0xff]  }
 0x183   : > { %2975 = vmatprep.subr.bf16.mxu0 %v3283_v39  ;;  %2938 = vmatpush3.bf16.msra.mxu1 %v3282_v40  ;;  %v3320_v7 = vld [vmem:[#allocation3 + $0xa0] ss:$36 sps:$4 sm:$0xff]   ;;  %v1097_v14 = vld [vmem:[#allocation3 + $0xe8] sm:$0xff]  ;;  %v3332_v20 = vld [vmem:[#allocation3 + $0xb0] ss:$36 sps:$4 sm:$0xff]  }
 0x184   : > { %2939 = vmatprep.subr.bf16.mxu1 %v3287_v42  ;;  %v2667_v15 = vcombine.low %v1097_v14, %v1102_v11  ;;  %v3329_v16 = vld [vmem:[#allocation9 + $0x200] sm:$0xff]   ;;  %v3331_v19 = vld [vmem:[#allocation3 + $0x68] ss:$36 sps:$4 sm:$0xff]   ;;  %v3333_v21 = vld [vmem:[#allocation3 + $0xf8] ss:$36 sps:$4 sm:$0xff]  }
 0x185   : > { %1979 = vmatmul.mubr.bf16.gmra.mxu0 %v3281_v44  ;;  %1922 = vmatmul.mubr.bf16.gmra.mxu1 %v3288_v47  ;;  %v3328_v17 = vld [vmem:[#allocation3 + $0x20] ss:$36 sps:$4 sm:$0xff]   ;;  %v3334_v22 = vld [vmem:[#allocation10 + $0x38] sm:$0xff]   ;;  %v3335_v23 = vld [vmem:[#allocation10 + $0x30] sm:$0xff]  }
 0x186   : > { %1986 = vmatprep.mubr.bf16.mxu0 %v3284_v45  ;;  %2976 = vmatpush3.bf16.msra.mxu0 %v3286_v41  ;;  %v3336_v24 = vld [vmem:[#allocation10 + $0x28] sm:$0xff]   ;;  %v3337_v25 = vld [vmem:[#allocation10 + $0x20] sm:$0xff]   ;;  %v3338_v26 = vld [vmem:[#allocation10 + $0x18] sm:$0xff]  }
 0x187   : > { %2977 = vmatprep.subr.bf16.mxu0 %v3290_v43  ;;  %2940 = vmatpush3.bf16.msra.mxu1 %v3289_v46  ;;  %v3339_v27 = vld [vmem:[#allocation10 + $0x10] sm:$0xff]   ;;  %v3340_v28 = vld [vmem:[#allocation10 + $0x8] sm:$0xff]   ;;  %v3341_v29 = vld [vmem:[#allocation10] sm:$0xff]  }
 0x188   : > { %2027 = vmatprep.mubr.bf16.mxu1 %v3293_v50  ;;  %2941 = vmatprep.subr.bf16.mxu1 %v3295_v49 }
 0x18a   : > { %2978 = vmatpush3.bf16.msra.mxu0 %v3294_v48 }
 0x18b   : > { %2979 = vmatprep.subr.bf16.mxu0 %v3298_v51  ;;  %2942 = vmatpush3.bf16.msra.mxu1 %v3297_v52 }
 0x18c   : > { %3055 = vmatprep.subr.bf16.mxu1 %v3303_v55 }
 0x18d   : > { %1987 = vmatmul.mubr.bf16.gmra.mxu0 %v3296_v54 }
 0x18e   : > { %2980 = vmatpush3.bf16.msra.mxu0 %v3299_v53  ;;  %2092 = vmatprep.mubr.bf16.mxu0 %v3302_v57 }
 0x18f   : > { %2981 = vmatprep.subr.bf16.mxu0 %v3304_v56  ;;  %2028 = vmatmul.mubr.bf16.vlgmr.msra.gmra.mxu1 %v3291_v58 }
 0x190   : > { %3056 = vmatpush3.bf16.msra.mxu1 %v3303_v55  ;;  %2035 = vmatprep.mubr.bf16.mxu1 %v3305_v61 }
 0x191   : > { %3057 = vmatprep.subr.bf16.mxu1 %v3308_v60 }
 0x192   : > { %2982 = vmatpush3.bf16.msra.mxu0 %v3307_v59 }
 0x193   : > { %3079 = vmatprep.subr.bf16.mxu0 %v3334_v22 }
 0x194   : > { %3058 = vmatpush3.bf16.msra.mxu1 %v3308_v60 }
 0x195   : > { %2093 = vmatmul.mubr.bf16.vlgmr.msra.gmra.mxu0 %v3300_v63  ;;  %3059 = vmatprep.subr.bf16.mxu1 %v3311_v62 }
 0x196   : > { %2100 = vmatprep.mubr.bf16.mxu0 %v3309_v0  ;;  %3080 = vmatpush3.bf16.msra.mxu0 %v3334_v22 }
 0x197   : > { %2036 = vmatmul.mubr.bf16.gmra.mxu1 %v3312_v1  ;;  %3081 = vmatprep.subr.bf16.mxu0 %v3335_v23 }
 0x198   : > { %3060 = vmatpush3.bf16.msra.mxu1 %v3311_v62  ;;  %2043 = vmatprep.mubr.bf16.mxu1 %v3313_v3 }
 0x199   : > { %3061 = vmatprep.subr.bf16.mxu1 %v3315_v2 }
 0x19a   : > { %3082 = vmatpush3.bf16.msra.mxu0 %v3335_v23 }
 0x19b   : > { %3083 = vmatprep.subr.bf16.mxu0 %v3336_v24 }
 0x19c   : > { %3062 = vmatpush3.bf16.msra.mxu1 %v3315_v2 }
 0x19d   : > { %2101 = vmatmul.mubr.bf16.gmra.mxu0 %v3316_v5  ;;  %3063 = vmatprep.subr.bf16.mxu1 %v3319_v4 }
 0x19e   : > { %2108 = vmatprep.mubr.bf16.mxu0 %v3317_v6  ;;  %3084 = vmatpush3.bf16.msra.mxu0 %v3336_v24 }
 0x19f   : > { %2044 = vmatmul.mubr.bf16.gmra.mxu1 %v3320_v7  ;;  %3085 = vmatprep.subr.bf16.mxu0 %v3337_v25 }
 0x1a0   : > { %3064 = vmatpush3.bf16.msra.mxu1 %v3319_v4  ;;  %2051 = vmatprep.mubr.bf16.mxu1 %v3321_v9 }
 0x1a1   : > { %3065 = vmatprep.subr.bf16.mxu1 %v3323_v8 }
 0x1a2   : > { %3086 = vmatpush3.bf16.msra.mxu0 %v3337_v25 }
 0x1a3   : > { %3087 = vmatprep.subr.bf16.mxu0 %v3338_v26 }
 0x1a4   : > { %3066 = vmatpush3.bf16.msra.mxu1 %v3323_v8 }
 0x1a5   : > { %2109 = vmatmul.mubr.bf16.gmra.mxu0 %v3324_v12  ;;  %3067 = vmatprep.subr.bf16.mxu1 %v3327_v10 }
 0x1a6   : > { %2116 = vmatprep.mubr.bf16.mxu0 %v3325_v13  ;;  %3088 = vmatpush3.bf16.msra.mxu0 %v3338_v26 }
 0x1a7   : > { %2052 = vmatmul.mubr.bf16.gmra.mxu1 %v2667_v15  ;;  %3089 = vmatprep.subr.bf16.mxu0 %v3339_v27 }
 0x1a8   : > { %3068 = vmatpush3.bf16.msra.mxu1 %v3327_v10  ;;  %3071 = vmatprep.mubr.bf16.mxu1 %v3328_v17 }
 0x1a9   : > { %3069 = vmatprep.subr.bf16.mxu1 %v3329_v16 }
 0x1aa   : > { %3090 = vmatpush3.bf16.msra.mxu0 %v3339_v27 }
 0x1ab   : > { %3091 = vmatprep.subr.bf16.mxu0 %v3340_v28 }
 0x1ac   : > { %3070 = vmatpush3.bf16.msra.mxu1 %v3329_v16 }
 0x1ad   : > { %2117 = vmatmul.mubr.bf16.gmra.mxu0 %v3330_v18  ;;  %3103 = vmatprep.subr.bf16.mxu1 %v3334_v22 }
 0x1ae   : > { %3092 = vmatpush3.bf16.msra.mxu0 %v3340_v28 }
 0x1af   : > { %3072 = vmatmul.mubr.bf16.vlgmr.msra.gmra.mxu1 %v3331_v19  ;;  %3093 = vmatprep.subr.bf16.mxu0 %v3341_v29 }
 0x1b0   : > { %3075 = vmatprep.mubr.bf16.mxu1 %v3332_v20  ;;  %3111 = vmatpush3.bf16.msra.mxu1 %v3334_v22 }
 0x1b1   : > { %3104 = vmatprep.subr.bf16.mxu1 %v3335_v23 }
 0x1b2   : > { %3094 = vmatpush3.bf16.msra.mxu0 %v3341_v29 }
 0x1b4   : > { %3112 = vmatpush3.bf16.msra.mxu1 %v3335_v23 }
 0x1b5   : > { %3105 = vmatprep.subr.bf16.mxu1 %v3336_v24 }
 0x1b7   : > { %3076 = vmatmul.mubr.bf16.gmra.mxu1 %v3333_v21 }
 0x1b8   : > { %3113 = vmatpush3.bf16.msra.mxu1 %v3336_v24 }
 0x1b9   : > { %3106 = vmatprep.subr.bf16.mxu1 %v3337_v25 }
 0x1bc   : > { %3114 = vmatpush3.bf16.msra.mxu1 %v3337_v25 }
 0x1bd   : > { %3107 = vmatprep.subr.bf16.mxu1 %v3338_v26 }
 0x1c0   : > { %3115 = vmatpush3.bf16.msra.mxu1 %v3338_v26 }
 0x1c1   : > { %3108 = vmatprep.subr.bf16.mxu1 %v3339_v27 }
 0x1c4   : > { %3116 = vmatpush3.bf16.msra.mxu1 %v3339_v27 }
 0x1c5   : > { %3109 = vmatprep.subr.bf16.mxu1 %v3340_v28 }
 0x1c8   : > { %3117 = vmatpush3.bf16.msra.mxu1 %v3340_v28 }
 0x1c9   : > { %3110 = vmatprep.subr.bf16.mxu1 %v3341_v29 }
 0x1cc   : > { %3118 = vmatpush3.bf16.msra.mxu1 %v3341_v29 }
 0x22d   : > { %v2863_v30 = vpop.f32.mrf.mxu1 }
 0x22f   : > { %v2864_v31 = vpop.f32.mrf.mxu1 }
 0x230   : > { %v2865_v24 = vadd.f32 %v2864_v31, %v2863_v30 }
 0x231   : > { %v3769_v32 = vpop.f32.mrf.mxu1 }
 0x233   : > { %v3771_v34 = vpop.f32.mrf.mxu1 }
 0x234   : > { %v2868_v30 = vadd.f32 %v3771_v34, %v3769_v32 }
 0x235   : > { %v2903_v33 = vpop.f32.mrf.mxu0  ;;  %v2869_v36 = vpop.f32.mrf.mxu1 }
 0x237   : > { %v2904_v35 = vpop.f32.mrf.mxu0  ;;  %v2870_v38 = vpop.f32.mrf.mxu1 }
 0x238   : > { %v2905_v20 = vadd.f32 %v2904_v35, %v2903_v33  ;;  %v2871_v25 = vadd.f32 %v2870_v38, %v2869_v36 }
 0x239   : > { %v2906_v37 = vpop.f32.mrf.mxu0  ;;  %v2872_v40 = vpop.f32.mrf.mxu1 }
 0x23b   : > { %v2907_v39 = vpop.f32.mrf.mxu0  ;;  %v2873_v42 = vpop.f32.mrf.mxu1 }
 0x23d   : > { %v2909_v41 = vpop.f32.mrf.mxu0  ;;  %v2875_v44 = vpop.f32.mrf.mxu1 }
 0x23f   : > { %v2910_v43 = vpop.f32.mrf.mxu0  ;;  %v2876_v46 = vpop.f32.mrf.mxu1 }
 0x240   : > { %v2911_v21 = vadd.f32 %v2910_v43, %v2909_v41  ;;  %v2877_v31 = vadd.f32 %v2876_v46, %v2875_v44 }
 0x241   : > { %v2912_v45 = vpop.f32.mrf.mxu0  ;;  %v3773_v48 = vpop.f32.mrf.mxu1 }
 0x243   : > { %v2913_v47 = vpop.f32.mrf.mxu0  ;;  %v3775_v50 = vpop.f32.mrf.mxu1 }
 0x244   : > { %v2914_v28 = vadd.f32 %v2913_v47, %v2912_v45 }
 0x245   : > { %v2915_v49 = vpop.f32.mrf.mxu0  ;;  %v3777_v52 = vpop.f32.mrf.mxu1 }
 0x247   : > { %v2916_v51 = vpop.f32.mrf.mxu0  ;;  %v3781_v54 = vpop.f32.mrf.mxu1 }
 0x248   : > { %v2883_v34 = vadd.f32 %v3781_v54, %v3777_v52 }
 0x249   : > { %v3779_v53 = vpop.f32.mrf.mxu0  ;;  %v3785_v56 = vpop.f32.mrf.mxu1 }
 0x24a   : > { %3934 = vst [vmem:[#allocation18_spill] sm:$0xff] %v3779_v53  ;;  %3936 = vst [vmem:[#allocation20_spill] sm:$0xff] %v3785_v56  ;;  %v1965_v56 = vadd.f32 %v2905_v20, %v2865_v24  ;;  %v2917_v53 = vadd.f32 %v2916_v51, %v2915_v49 }
 0x24b   : > { %v3783_v55 = vpop.f32.mrf.mxu0  ;;  %v3787_v58 = vpop.f32.mrf.mxu1 }
 0x24c   : > { %3935 = vst [vmem:[#allocation19_spill] sm:$0xff] %v3783_v55  ;;  %3937 = vst [vmem:[#allocation21_spill] sm:$0xff] %v3787_v58  ;;  %v1981_v51 = vadd.f32 %v2917_v53, %v2877_v31 }
 0x24d   : > { %v2921_v57 = vpop.f32.mrf.mxu0 }
 0x24f   : > { %v2922_v59 = vpop.f32.mrf.mxu0  ;;  %v2943_v60 = vpop.f32.mrf.mxu1 }
 0x251   : > { %v3789_v61 = vpop.f32.mrf.mxu0  ;;  %v2944_v62 = vpop.f32.mrf.mxu1 }
 0x252   : > { %3938 = vst [vmem:[#allocation22_spill] sm:$0xff] %v3789_v61  ;;  %v2945_v29 = vadd.f32 %v2944_v62, %v2943_v60 }
 0x253   : > { %v3791_v63 = vpop.f32.mrf.mxu0  ;;  %v2946_v0 = vpop.f32.mrf.mxu1 }
 0x254   : > { %3939 = vst [vmem:[#allocation23_spill] sm:$0xff] %v3791_v63  ;;  %v2908_v63 = vadd.f32 %v2907_v39, %v2906_v37  ;;  %v2030_v45 = vadd.f32 %v2945_v29, %v1965_v56  ;;  %v2880_v39 = vadd.f32 %v3775_v50, %v3773_v48  ;;  %v2744_v48 = vld [vmem:[%s3904_s5] ss:$0 sm:$0xff] }
 0x255   : > { %v2983_v1 = vpop.f32.mrf.mxu0  ;;  %v2947_v2 = vpop.f32.mrf.mxu1 }
 0x256   : > { %v2948_v47 = vadd.f32 %v2947_v2, %v2946_v0  ;;  %v1968_v37 = vadd.f32 %v2908_v63, %v2868_v30  ;;  %v3942_v2 = vld [vmem:[#allocation18_spill] sm:$0xff]  ;;  %v3943_v63 = vld [vmem:[#allocation19_spill] sm:$0xff] }
 0x257   : > { %v2984_v3 = vpop.f32.mrf.mxu0  ;;  %v2949_v4 = vpop.f32.mrf.mxu1 }
 0x258   : > { %v2985_v33 = vadd.f32 %v2984_v3, %v2983_v1 }
 0x259   : > { %v2986_v5 = vpop.f32.mrf.mxu0  ;;  %v2950_v6 = vpop.f32.mrf.mxu1 }
 0x25a   : > { %v2951_v26 = vadd.f32 %v2950_v6, %v2949_v4  ;;  %v2095_v32 = vadd.f32 %v2985_v33, %v2030_v45  ;;  %v2920_v6 = vadd.f32 %v3943_v63, %v3942_v2 }
 0x25b   : > { %v2987_v7 = vpop.f32.mrf.mxu0  ;;  %v2952_v8 = vpop.f32.mrf.mxu1 }
 0x25c   : > { %v2988_v1 = vadd.f32 %v2987_v7, %v2986_v5  ;;  %v1984_v24 = vadd.f32 %v2920_v6, %v2880_v39 }
 0x25d   : > { %v2989_v9 = vpop.f32.mrf.mxu0  ;;  %v2953_v10 = vpop.f32.mrf.mxu1 }
 0x25e   : > { %v2954_v35 = vadd.f32 %v2953_v10, %v2952_v8  ;;  %v2033_v8 = vadd.f32 %v2948_v47, %v1968_v37  ;;  %v3947_v10 = vld [vmem:[#allocation21_spill] sm:$0xff] }
 0x25f   : > { %v2990_v11 = vpop.f32.mrf.mxu0  ;;  %v2955_v12 = vpop.f32.mrf.mxu1 }
 0x260   : > { %v2991_v61 = vadd.f32 %v2990_v11, %v2989_v9  ;;  %v3946_v9 = vld [vmem:[#allocation20_spill] sm:$0xff] }
 0x261   : > { %v2992_v13 = vpop.f32.mrf.mxu0  ;;  %v2956_v14 = vpop.f32.mrf.mxu1  ;;  %v2886_v11 = vadd.f32 %v3947_v10, %v3946_v9  ;;  %v2393_v10 = vld [vmem:[%s3731_s11 + $0x10] sm:$0xff] }
 0x262   : > { %v2957_v44 = vadd.f32 %v2956_v14, %v2955_v12 }
 0x263   : > { %v2993_v15 = vpop.f32.mrf.mxu0  ;;  %v3793_v16 = vpop.f32.mrf.mxu1 }
 0x264   : > { %3940 = vst [vmem:[#allocation24_spill] sm:$0xff] %v3793_v16  ;;  %v1973_v16 = vadd.f32 %v2911_v21, %v2871_v25  ;;  %v2994_v60 = vadd.f32 %v2993_v15, %v2992_v13  ;;  %v2098_v15 = vadd.f32 %v2988_v1, %v2033_v8 }
 0x265   : > { %v2995_v17 = vpop.f32.mrf.mxu0  ;;  %v3795_v18 = vpop.f32.mrf.mxu1 }
 0x266   : > { %3941 = vst [vmem:[#allocation25_spill] sm:$0xff] %v3795_v18  ;;  %v2874_v18 = vadd.f32 %v2873_v42, %v2872_v40  ;;  %v2038_v36 = vadd.f32 %v2951_v26, %v1973_v16  ;;  %v2923_v40 = vadd.f32 %v2922_v59, %v2921_v57  ;;  %v3944_v59 = vld [vmem:[#allocation22_spill] sm:$0xff]  ;;  %v2046_v16 = vadd.f32 %v2957_v44, %v1981_v51 }
 0x267   : > { %v2996_v19 = vpop.f32.mrf.mxu0  ;;  %v2961_v22 = vpop.f32.mrf.mxu1 }
 0x268   : > { %v1976_v43 = vadd.f32 %v2914_v28, %v2874_v18  ;;  %v2103_v42 = vadd.f32 %v2991_v61, %v2038_v36  ;;  %v1989_v57 = vadd.f32 %v2923_v40, %v2883_v34  ;;  %v3945_v61 = vld [vmem:[#allocation23_spill] sm:$0xff]  ;;  %v2997_v7 = vadd.f32 %v2996_v19, %v2995_v17  ;;  %v2745_v17 = vld [vmem:[%s3905_s6] ss:$0 sm:$0xff] }
 0x269   : > { %v3797_v23 = vpop.f32.mrf.mxu0  ;;  %v2962_v27 = vpop.f32.mrf.mxu1  ;;  %v2926_v5 = vadd.f32 %v3945_v61, %v3944_v59 }
 0x26a   : > { %v2041_v3 = vadd.f32 %v2954_v35, %v1976_v43  ;;  %v2963_v46 = vadd.f32 %v2962_v27, %v2961_v22  ;;  %v2111_v30 = vadd.f32 %v2997_v7, %v2046_v16 }
 0x26b   : > { %v3799_v58 = vpop.f32.mrf.mxu0  ;;  %v2964_v55 = vpop.f32.mrf.mxu1  ;;  %v3948_v25 = vld [vmem:[#allocation24_spill] sm:$0xff]  ;;  %v1992_v29 = vadd.f32 %v2926_v5, %v2886_v11 }
 0x26c   : > { %v2106_v53 = vadd.f32 %v2994_v60, %v2041_v3  ;;  %v2054_v18 = vadd.f32 %v2963_v46, %v1989_v57 }
 0x26d   : > { %v3001_v41 = vpop.f32.mrf.mxu0  ;;  %v2965_v38 = vpop.f32.mrf.mxu1  ;;  %v3949_v26 = vld [vmem:[#allocation25_spill] sm:$0xff] }
 0x26e   : > { %v2966_v20 = vadd.f32 %v2965_v38, %v2964_v55  ;;  %v2960_v27 = vadd.f32 %v3949_v26, %v3948_v25  ;;  %v3000_v55 = vadd.f32 %v3799_v58, %v3797_v23 }
 0x26f   : > { %v3002_v62 = vpop.f32.mrf.mxu0  ;;  %v3073_v49 = vpop.f32.mrf.mxu1 }
 0x270   : > { %v2168_v56 = vadd.f32 %v3073_v49, %v2103_v42  ;;  %v3003_v52 = vadd.f32 %v3002_v62, %v3001_v41  ;;  %v2057_v43 = vadd.f32 %v2966_v20, %v1992_v29  ;;  %v2049_v62 = vadd.f32 %v2960_v27, %v1984_v24 }
 0x271   : > { %v3004_v4 = vpop.f32.mrf.mxu0  ;;  %v2159_v0 = vpop.f32.mrf.mxu1 }
 0x272   : > { %v2160_v50 = vadd.f32 %v2159_v0, %v2095_v32  ;;  %v2199_v21 = vmul.f32 %v2744_v48, %v2168_v56  ;;  %v2119_v35 = vadd.f32 %v3003_v52, %v2054_v18 }
 0x273   : > { %v3074_v54 = vpop.f32.mrf.mxu1  ;;  %v3005_v12 = vpop.f32.mrf.mxu0 }
 0x274   : > { %v2197_v13 = vmul.f32 %v2744_v48, %v2160_v50  ;;  %v2171_v14 = vadd.f32 %v3074_v54, %v2106_v53  ;;  %v3006_v33 = vadd.f32 %v3005_v12, %v3004_v4  ;;  %v2214_v45 = vadd.f32 %v2745_v17, %v2199_v21  ;;  %v2755_v54 = vld [vmem:[%s3908_s9] ss:$0 sm:$0xff]  ;;  %v2394_v21 = vld [vmem:[%s3731_s11 + $0x18] sm:$0xff] }
 0x275   : > { %v2162_v22 = vpop.f32.mrf.mxu1  ;;  %v2114_v4 = vadd.f32 %v3000_v55, %v2049_v62 }
 0x276   : > { %v2200_v19 = vmul.f32 %v2744_v48, %v2171_v14  ;;  %v2163_v28 = vadd.f32 %v2162_v22, %v2098_v15  ;;  %v2212_v31 = vadd.f32 %v2745_v17, %v2197_v13  ;;  %v2122_v42 = vadd.f32 %v3006_v33, %v2057_v43  ;;  %v2391_v14 = vld [vmem:[%s3731_s11] sm:$0xff] }
 0x277   : > { %v3077_v41 = vpop.f32.mrf.mxu1  ;;  %v2222_v32 = vmax.f32 %v2214_v45, 0.0  ;;  %v2395_v43 = vld [vmem:[%s3731_s11 + $0x20] sm:$0xff] }
 0x278   : > { %v2215_v36 = vadd.f32 %v2745_v17, %v2200_v19  ;;  %v2198_v38 = vmul.f32 %v2744_v48, %v2163_v28  ;;  %v2184_v47 = vadd.f32 %v3077_v41, %v2119_v35  ;;  %v2220_v51 = vmax.f32 %v2212_v31, 0.0  ;;  %v2397_v41 = vld [vmem:[%s3731_s11 + $0x30] sm:$0xff] }
 0x279   : > { %v2175_v60 = vpop.f32.mrf.mxu1 }
 0x27a   : > { %v2213_v37 = vadd.f32 %v2745_v17, %v2198_v38  ;;  %v2176_v39 = vadd.f32 %v2175_v60, %v2111_v30  ;;  %v2223_v40 = vmax.f32 %v2215_v36, 0.0  ;;  %v2203_v34 = vmul.f32 %v2744_v48, %v2184_v47 }
 0x27b   : > { %v3078_v49 = vpop.f32.mrf.mxu1 }
 0x27c   : > { %v2221_v1 = vmax.f32 %v2213_v37, 0.0  ;;  %v2201_v3 = vmul.f32 %v2744_v48, %v2176_v39  ;;  %v2187_v58 = vadd.f32 %v3078_v49, %v2122_v42  ;;  %v2229_v56 = vpack.c.bf16 %v2223_v40, %v2222_v32  ;;  %v2398_v39 = vld [vmem:[%s3731_s11 + $0x38] sm:$0xff] }
 0x27d   : > { %v2178_v23 = vpop.f32.mrf.mxu1  ;;  %v2218_v6 = vadd.f32 %v2745_v17, %v2203_v34 }
 0x27e   : > { %v2179_v44 = vadd.f32 %v2178_v23, %v2114_v4  ;;  %v2228_v46 = vpack.c.bf16 %v2221_v1, %v2220_v51  ;;  %v2204_v0 = vmul.f32 %v2744_v48, %v2187_v58  ;;  %v2216_v2 = vadd.f32 %v2745_v17, %v2201_v3  ;;  %v2396_v3 = vld [vmem:[%s3731_s11 + $0x28] sm:$0xff] }
 0x27f   : > { %v2226_v61 = vmax.f32 %v2218_v6, 0.0 }
 0x280   : > { %v2202_v63 = vmul.f32 %v2744_v48, %v2179_v44  ;;  %3095 = vmatprep.mubr.bf16.mxu0 %v2228_v46  ;;  %v2219_v8 = vadd.f32 %v2745_v17, %v2204_v0  ;;  %v2224_v57 = vmax.f32 %v2216_v2, 0.0  ;;  %v2754_v48 = vld [vmem:[%s3907_s8] ss:$0 sm:$0xff] }
 0x281   : > { %3096 = vmatmul.mubr.bf16.vlgmr.msra.gmra.mxu0 %v2229_v56 }
 0x282   : > { %v2217_v50 = vadd.f32 %v2745_v17, %v2202_v63  ;;  %v2227_v53 = vmax.f32 %v2219_v8, 0.0  ;;  %v2392_v17 = vld [vmem:[%s3731_s11 + $0x8] sm:$0xff]  ;;  %s2424_s11 = scalar_lea.sflag [#allocation6], %s3725_s7 }
 0x284   : > { %v2225_v59 = vmax.f32 %v2217_v50, 0.0  ;;  %v2231_v7 = vpack.c.bf16 %v2227_v53, %v2226_v61 }
 0x286   : > { %v2230_v5 = vpack.c.bf16 %v2225_v59, %v2224_v57 }
 0x288   : > { %3099 = vmatprep.mubr.bf16.mxu1 %v2230_v5 }
 0x289   : > { %3100 = vmatmul.mubr.bf16.vlgmr.msra.gmra.mxu1 %v2231_v7 }
 0x341   : > { %v3097_v52 = vpop.f32.mrf.mxu0 }
 0x342   : > { %v2370_v9 = vmul.f32 %v3097_v52, %v2754_v48 }
 0x343   : > { %v2330_v11 = vpop.f32.mrf.mxu0 }
 0x344   : > { %v2385_v12 = vadd.f32 %v2755_v54, %v2370_v9  ;;  %v2368_v13 = vmul.f32 %v2754_v48, %v2330_v11 }
 0x345   : > { %v3098_v15 = vpop.f32.mrf.mxu0 }
 0x346   : > { %v2401_v16 = vadd.f32 %v2393_v10, %v2385_v12  ;;  %v2383_v18 = vadd.f32 %v2755_v54, %v2368_v13  ;;  %v2371_v20 = vmul.f32 %v3098_v15, %v2754_v48 }
 0x347   : > { %v2333_v22 = vpop.f32.mrf.mxu0 }
 0x348   : > { %v2409_v24 = vmax.f32 %v2401_v16, 0.0  ;;  %v2399_v25 = vadd.f32 %v2391_v14, %v2383_v18  ;;  %v2386_v26 = vadd.f32 %v2755_v54, %v2371_v20  ;;  %v2369_v27 = vmul.f32 %v2754_v48, %v2333_v22 }
 0x349   : > { %v3101_v19 = vpop.f32.mrf.mxu1 }
 0x34a   : > { %2417 = vst [vmem:[%s3835_s1 + $0x10] sm:$0xff] %v2409_v24  ;;  %v2407_v28 = vmax.f32 %v2399_v25, 0.0  ;;  %v2402_v29 = vadd.f32 %v2394_v21, %v2386_v26  ;;  %v2384_v33 = vadd.f32 %v2755_v54, %v2369_v27  ;;  %v2374_v35 = vmul.f32 %v3101_v19, %v2754_v48 }
 0x34b   : > { %v2346_v30 = vpop.f32.mrf.mxu1 }
 0x34c   : > { %2415 = vst [vmem:[%s3835_s1] sm:$0xff] %v2407_v28  ;;  %v2410_v55 = vmax.f32 %v2402_v29, 0.0  ;;  %v2400_v31 = vadd.f32 %v2392_v17, %v2384_v33  ;;  %v2389_v36 = vadd.f32 %v2755_v54, %v2374_v35  ;;  %v2372_v38 = vmul.f32 %v2754_v48, %v2346_v30 }
 0x34d   : > { %v3102_v45 = vpop.f32.mrf.mxu1 }
 0x34e   : > { %2418 = vst [vmem:[%s3835_s1 + $0x18] sm:$0xff] %v2410_v55  ;;  %v2408_v47 = vmax.f32 %v2400_v31, 0.0  ;;  %v2405_v60 = vadd.f32 %v2397_v41, %v2389_v36  ;;  %v2387_v62 = vadd.f32 %v2755_v54, %v2372_v38  ;;  %v2375_v37 = vmul.f32 %v3102_v45, %v2754_v48 }
 0x34f   : > { %v2349_v40 = vpop.f32.mrf.mxu1 }
 0x350   : > { %2416 = vst [vmem:[%s3835_s1 + $0x8] sm:$0xff] %v2408_v47  ;;  %v2413_v42 = vmax.f32 %v2405_v60, 0.0  ;;  %v2403_v49 = vadd.f32 %v2395_v43, %v2387_v62  ;;  %v2390_v51 = vadd.f32 %v2755_v54, %v2375_v37  ;;  %v2373_v1 = vmul.f32 %v2754_v48, %v2349_v40 }
 0x352   : > { %2421 = vst [vmem:[%s3835_s1 + $0x30] sm:$0xff] %v2413_v42  ;;  %v2411_v4 = vmax.f32 %v2403_v49, 0.0  ;;  %v2406_v32 = vadd.f32 %v2398_v39, %v2390_v51  ;;  %v2388_v34 = vadd.f32 %v2755_v54, %v2373_v1 }
 0x354   : > { %2419 = vst [vmem:[%s3835_s1 + $0x20] sm:$0xff] %v2411_v4  ;;  %v2414_v58 = vmax.f32 %v2406_v32, 0.0  ;;  %v2404_v23 = vadd.f32 %v2396_v3, %v2388_v34 }
 0x356   : > { %2422 = vst [vmem:[%s3835_s1 + $0x38] sm:$0xff] %v2414_v58  ;;  %v2412_v44 = vmax.f32 %v2404_v23, 0.0 }
 0x358   : > { %2420 = vst [vmem:[%s3835_s1 + $0x28] sm:$0xff] %v2412_v44 }
 0x359   : > { %3461 = shalt.err (!%p3458_p9)
}
 0x35a   : > { %s3462_s23 = scalar_lea.hbm %s3852_s18, 1024  ;;  %s3466_s28 = scalar_lea.hbm %s3909_s10, 2048 }
 0x35b   : > { %p3463_p1 = scmp.ne.s32.totalorder %s3852_s18, %s3462_s23  ;;  %p3467_p11 = scmp.lt.s32.totalorder %s3852_s18, %s3909_s10 }
 0x35c   : > { %p3468_p13 = scmp.lt.s32.totalorder %s3466_s28, %s3462_s23 }
 0x35d   : > { %p3464_p8 = pnand %p3463_p1, %p3950_p6 }
 0x35e   : > { %p3469_p2 = por %p3468_p13, %p3467_p11 }
 0x35f   : > { %p3465_p10 = pneg %p3464_p8 }
 0x361   : > { %p3470_p4 = pnand %p3469_p2, %p3465_p10 }
 0x363   : > { %3473 = shalt.err (!%p3470_p4)
}
 0x364   : > { %s3533_s21 = smov 128   ;;  %s3534_s29 = smov 8  }
 0x365   : > { %3133 = dma.vmem_to_hbm [thread:$0]  (%p3950_p6), %s3854_s19, 1024, %s3852_s18, %s2424_s11, %s3533_s21, %s3533_s21, %s3534_s29  }
 0x366 PF: > { %s2452_s24 = sand.u32 1, %s3508_s13   ;;  %p3951_p12 = scmp.ne.s32.totalorder %s3918_s20, 0 }
 0x367   : > { %p3952_p0 = scmp.ge.s32.totalorder %s3520_s16, 2  ;;  %s2453_s17 = scalar_lea.sflag [#allocation6], %s2452_s24 }
 0x369   : > { %p3150_p5 = pnand %p3952_p0, %p3951_p12 }
 0x36b   : > { %p3151_p3 = pneg %p3150_p5 }
 0x36d   : > { %3503 = dma.done.wait (%p3151_p3), %s2453_s17, 1024  }
 0x36e   : > { %3505 = vsyncadd (%p3151_p3), %s2453_s17, 4294966272  ;;  %s3953_s12 = sld [smem:[#allocation17_spill]]  ;;  %p25_p7 = scmp.ge.s32.totalorder %s3670_s26, 4  }
 0x36f   : > { %s3954_s13 = smov %s3512_s14  ;;  %s3955_s14 = smov %s3516_s15 }
 0x370   : > { %s3957_s16 = smov %s3670_s26  ;;  %27 = sbr.rel (!%p25_p7) target bundleno = 11 (0xb), region = 120 }
 0x374   : > { %s3956_s15 = smov %s3953_s12 }
 0x375   :  { %2458 = vsyncpa [#allocation5], 1 }
 0x376   :  { %2460 = vsyncpa [#allocation5 + $0x1], 1 }
 0x377   :  { %2461 = vsyncpa [#allocation8], 1 }
 0x378   :  { %2462 = vsyncpa [#allocation11], 1 }
 0x379   :  { %2463 = vsyncpa [#allocation6], 1 }
 0x37a   :  { %2465 = vsyncpa [#allocation6 + $0x1], 1 }

</bundles_post_ra>
